<compile_context>
chip_gen: v5e
topology: v5e:2x2
jax: 0.10.0
libtpu: 0.0.40
codegen_flags: <defaults>
</compile_context>

<pallas_src>
import jax
import jax.numpy as jnp
from jax import lax
from jax.experimental import pallas as pl
from jax.experimental.pallas import tpu as pltpu


# ------------------------------ static config -------------------------------

LEARN_SIZE = 8
INPUT_SIZE = 16
KSIZE, STRIDE, PAD = 11, 4, 2
RGB_CH = 3                                   # streamed channels (coords folded)
K_RAW = RGB_CH * KSIZE * KSIZE               # 363 real im2col taps
K_PAD = 384                                  # 3*128 lanes (incl. one-hot cols)
OH = (INPUT_SIZE + 2 * PAD - KSIZE) // STRIDE + 1   # 3
OW = OH
N_POS = OH * OW                              # 9
MAX_TB = 128                                 # max batch rows per grid step

assert K_RAW + N_POS <= K_PAD


def _round_up(x, m):
    return (x + m - 1) // m * m


# ----------------------------- fused Pallas kernel --------------------------

def _nets_fused_kernel(p_ref, wf_ref, z2w_ref, f1w_ref, f2w_ref, f3w_ref,
                       b_ref, o_ref):
    """One batch tile: fused [conv1 x z1] -> ReLU -> z2 -> 3-layer fft head."""
    f32 = jnp.float32
    n_pos = p_ref.shape[0]
    tb, c2 = o_ref.shape
    c10p = z2w_ref.shape[1]                  # z-channel slab (c10 padded to 128)
    c20 = f2w_ref.shape[0]

    z2b = b_ref[0:1, :c10p]                  # zeros beyond c10 by construction
    acc = jnp.zeros((tb, c20), f32)          # fft layer-1 accumulator (value)

    for pos in range(n_pos):                 # static unroll over 9 positions
        # conv1 (x) z1 in one MXU pass; the per-position bias rides the
        # one-hot patch columns, so the bias add is part of the matmul.
        h = jnp.maximum(
            jnp.dot(p_ref[pos], wf_ref[...], preferred_element_type=f32), 0.0)
        # Second 1x1 conv of ZConv (padded channels stay exactly zero).
        zc = jnp.dot(h, z2w_ref[...], preferred_element_type=f32) + z2b
        # fft layer-1 partial contraction for this spatial position; the torch
        # channel-major flatten order is folded into f1w's packed layout.
        acc = acc + jnp.dot(zc, f1w_ref[pos], preferred_element_type=f32)

    g = jnp.maximum(acc + b_ref[1:2, :c20], 0.0)                      # fft-1
    g = jnp.maximum(
        jnp.dot(g, f2w_ref[...], preferred_element_type=f32)
        + b_ref[2:3, :c20], 0.0)                                      # fft-2
    o_ref[...] = (jnp.dot(g, f3w_ref[...], preferred_element_type=f32)
                  + b_ref[3:4, :c2])                                  # fft-3


def nets_fused(patches, kp, tb):
    n_pos, b_pad, k_pad = patches.shape
    c2 = kp["f3w"].shape[1]

    def resident(arr):                       # whole array, loaded once
        return pl.BlockSpec(arr.shape, lambda i, _n=arr.ndim: (0,) * _n)

    return pl.pallas_call(
        _nets_fused_kernel,
        grid=(b_pad // tb,),
        in_specs=[
            pl.BlockSpec((n_pos, tb, k_pad), lambda i: (0, i, 0)),   # patches
            resident(kp["wf"]), resident(kp["z2w"]), resident(kp["f1w"]),
            resident(kp["f2w"]), resident(kp["f3w"]), resident(kp["bias"]),
        ],
        out_specs=pl.BlockSpec((tb, c2), lambda i: (i, 0)),
        out_shape=jax.ShapeDtypeStruct((b_pad, c2), jnp.float32),
        compiler_params=pltpu.CompilerParams(
            dimension_semantics=("parallel",)),      # 2 TCs on v7x, free else
    )(patches, kp["wf"], kp["z2w"], kp["f1w"], kp["f2w"], kp["f3w"], kp["bias"])


# -------------------------------- JAX glue ----------------------------------

def extract_patches(x_rgb, b_pad):
    """(B, 3, H, W) -> (N_POS, B_pad, K_PAD) bf16 patch rows.

    Column layout per row: [363 RGB im2col taps | 9 one-hot position columns
    (these address the folded conv/coord/z1 bias rows of wf) | 12 zero pad].
    """
    b = x_rgb.shape[0]
    pat = lax.conv_general_dilated_patches(
        x_rgb, filter_shape=(KSIZE, KSIZE), window_strides=(STRIDE, STRIDE),
        padding=((PAD, PAD), (PAD, PAD)),
        dimension_numbers=("NCHW", "OIHW", "NHWC"))      # (B, OH, OW, 3*11*11)
    pat = pat.reshape(b, N_POS, K_RAW).astype(jnp.bfloat16)
    pat = jnp.transpose(pat, (1, 0, 2))                  # (N_POS, B, K_RAW)
    onehot = jnp.broadcast_to(
        jnp.eye(N_POS, dtype=jnp.bfloat16)[:, None, :], (N_POS, b, N_POS))
    pad_cols = jnp.zeros((N_POS, b, K_PAD - K_RAW - N_POS), jnp.bfloat16)
    pat = jnp.concatenate([pat, onehot, pad_cols], axis=-1)  # (N_POS, B, K_PAD)
    return jnp.pad(pat, ((0, 0), (0, b_pad - b), (0, 0)))


def pack_params(p, learn_size):
    """One-time packing: coord folding, conv1 x z1 fusion, lane padding,
    flatten-permutation folding, bias concatenation."""
    f32 = jnp.float32
    c10, c20, c2 = 10 * learn_size, 20 * learn_size, 2 * learn_size
    c10p = _round_up(c10, 128)
    conv_w, conv_b = p["conv_w"], p["conv_b"]
    z1w = p["z1_w"].T                                    # (16, c10)

    # AddCoords channels are input-independent -> their conv1 contribution is
    # a fixed per-output-position bias (use a real conv for exact padding /
    # stride semantics).  Coord convention matches the AddCoords used before:
    # xx varies along W, yy along H, both normalized to [-1, 1].
    h = w = INPUT_SIZE
    xx = jnp.broadcast_to(jnp.arange(w, dtype=f32)[None, :], (h, w)) / (w - 1) * 2.0 - 1.0
    yy = jnp.broadcast_to(jnp.arange(h, dtype=f32)[:, None], (h, w)) / (h - 1) * 2.0 - 1.0
    coord = jnp.stack([xx, yy])[None]                    # (1, 2, H, W)
    coord_out = lax.conv_general_dilated(
        coord, conv_w[:, RGB_CH:], window_strides=(STRIDE, STRIDE),
        padding=((PAD, PAD), (PAD, PAD)),
        dimension_numbers=("NCHW", "OIHW", "NCHW"))      # (1, 16, OH, OW)
    pos_bias = coord_out[0].reshape(16, N_POS).T + conv_b[None, :]   # (N_POS,16)

    # Fuse conv1 (RGB taps only) with z1 (no activation in between).  The
    # fused per-position bias (conv_b + coord term) @ z1w + z1_b sits in the
    # rows addressed by the one-hot patch columns.
    wc_rgb = conv_w[:, :RGB_CH].reshape(16, K_RAW).T     # (363, 16) (c,ki,kj)
    wf = jnp.zeros((K_PAD, c10p), f32)
    wf = wf.at[:K_RAW, :c10].set(wc_rgb @ z1w)
    wf = wf.at[K_RAW:K_RAW + N_POS, :c10].set(pos_bias @ z1w + p["z1_b"][None, :])
    wf = wf.astype(jnp.bfloat16)                         # bf16 feed, f32 accum

    z2w = jnp.zeros((c10p, c10p), f32).at[:c10, :c10].set(p["z2_w"].T)

    # fft layer 1: torch.flatten of the NCHW ZConv output uses index
    # c*N_POS + p; fold that permutation and the c10 -> c10p padding into the
    # weight so the kernel's position-major accumulate is exact.
    f1w = p["f1_w"].T.reshape(c10, N_POS, c20)           # [c, p, :]
    f1w = jnp.transpose(f1w, (1, 0, 2))                  # (N_POS, c10, c20)
    f1w = jnp.zeros((N_POS, c10p, c20), f32).at[:, :c10, :].set(f1w)

    bw = max(c20, c10p)                                  # packed-bias width
    bias = jnp.zeros((4, bw), f32)
    bias = bias.at[0, :c10].set(p["z2_b"])
    bias = bias.at[1, :c20].set(p["f1_b"])
    bias = bias.at[2, :c20].set(p["f2_b"])
    bias = bias.at[3, :c2].set(p["f3_b"])

    return {"wf": wf, "z2w": z2w, "f1w": f1w,
            "f2w": p["f2_w"].T, "f3w": p["f3_w"].T, "bias": bias}


def init_params(key, learn_size):
    """Draw torch-layout weights (same shapes as the nn.Module), then pack."""
    ks = jax.random.split(key, 12)
    s = 0.05
    f32 = jnp.float32
    c10, c20, c2 = 10 * learn_size, 20 * learn_size, 2 * learn_size
    zconv_size = c10 * N_POS
    in_ch = RGB_CH + 2                                   # 3 RGB + 2 coord

    torch_params = {
        "conv_w": s * jax.random.normal(ks[0], (16, in_ch, KSIZE, KSIZE), f32),
        "conv_b": s * jax.random.normal(ks[1], (16,), f32),
        "z1_w": s * jax.random.normal(ks[2], (c10, 16), f32),
        "z1_b": s * jax.random.normal(ks[3], (c10,), f32),
        "z2_w": s * jax.random.normal(ks[4], (c10, c10), f32),
        "z2_b": s * jax.random.normal(ks[5], (c10,), f32),
        "f1_w": s * jax.random.normal(ks[6], (c20, zconv_size), f32),
        "f1_b": s * jax.random.normal(ks[7], (c20,), f32),
        "f2_w": s * jax.random.normal(ks[8], (c20, c20), f32),
        "f2_b": s * jax.random.normal(ks[9], (c20,), f32),
        "f3_w": s * jax.random.normal(ks[10], (c2, c20), f32),
        "f3_b": s * jax.random.normal(ks[11], (c2,), f32),
    }
    return pack_params(torch_params, learn_size)


def nets_forward(kparams, x, learn_size):
    """x: (B, 3, H, W).  AddCoords (coord=True) is folded into the weights."""
    b = x.shape[0]
    b_pad = _round_up(max(b, 1), 8)
    tb = 8
    while tb * 2 <= min(b_pad, MAX_TB) and b_pad % (tb * 2) == 0:
        tb *= 2
    patches = extract_patches(x, b_pad)                  # (N_POS, B_pad, K_PAD)
    logits = nets_fused(patches, kparams, tb)            # (B_pad, 2*learn_size)
    return {"logit": logits[:b].reshape(b, 2, learn_size)}


# ---------------------------------- main -------------------------------------

if __name__ == "__main__":
    learn_size = LEARN_SIZE
    batch = 2

    key = jax.random.PRNGKey(0)
    k_param, k_x = jax.random.split(key)
    params = init_params(k_param, learn_size)
    x = jax.random.normal(k_x, (batch, 3, INPUT_SIZE, INPUT_SIZE), jnp.float32)

    fwd = jax.jit(lambda p, xx: nets_forward(p, xx, learn_size))
    out = fwd(params, x)
    jax.block_until_ready(out)

    logit = out["logit"]
    assert logit.shape == (batch, 2, learn_size), logit.shape
    assert logit.dtype == jnp.float32
    assert bool(jnp.all(jnp.isfinite(logit)))
    print("KERNEL_OK")
</pallas_src>

<mosaic_0001>
module attributes {stable_mosaic.version = 11 : i64} {
  func.func @_nets_fused_kernel(%arg0: i32, %arg1: memref<9x8x384xbf16, #tpu.memory_space<vmem>>, %arg2: memref<384x128xbf16, #tpu.memory_space<vmem>>, %arg3: memref<128x128xf32, #tpu.memory_space<vmem>>, %arg4: memref<9x128x160xf32, #tpu.memory_space<vmem>>, %arg5: memref<160x160xf32, #tpu.memory_space<vmem>>, %arg6: memref<160x16xf32, #tpu.memory_space<vmem>>, %arg7: memref<4x160xf32, #tpu.memory_space<vmem>>, %arg8: memref<8x16xf32, #tpu.memory_space<vmem>>) attributes {dimension_semantics = [#tpu.dimension_semantics<parallel>], iteration_bounds = array<i64: 1>, scalar_prefetch = 0 : i64, scratch_operands = 0 : i64, tpu.core_type = #tpu.core_type<tc>, window_params = [{transform_indices = @transform_0, window_bounds = array<i64: 9, 8, 384>}, {pipeline_mode = #tpu.pipeline_mode<synchronous>, transform_indices = @transform_1, window_bounds = array<i64: 384, 128>}, {pipeline_mode = #tpu.pipeline_mode<synchronous>, transform_indices = @transform_2, window_bounds = array<i64: 128, 128>}, {pipeline_mode = #tpu.pipeline_mode<synchronous>, transform_indices = @transform_3, window_bounds = array<i64: 9, 128, 160>}, {pipeline_mode = #tpu.pipeline_mode<synchronous>, transform_indices = @transform_4, window_bounds = array<i64: 160, 160>}, {pipeline_mode = #tpu.pipeline_mode<synchronous>, transform_indices = @transform_5, window_bounds = array<i64: 160, 16>}, {pipeline_mode = #tpu.pipeline_mode<synchronous>, transform_indices = @transform_6, window_bounds = array<i64: 4, 160>}, {transform_indices = @transform_7, window_bounds = array<i64: 8, 16>}]} {
    %c0 = arith.constant 0 : index
    %c0_0 = arith.constant 0 : index
    %0 = vector.load %arg7[%c0, %c0_0] : memref<4x160xf32, #tpu.memory_space<vmem>>, vector<1x128xf32>
    %cst = arith.constant 0.000000e+00 : f32
    %1 = vector.broadcast %cst : f32 to vector<8x160xf32>
    %c0_1 = arith.constant 0 : index
    %c0_2 = arith.constant 0 : index
    %c0_3 = arith.constant 0 : index
    %2 = vector.load %arg1[%c0_1, %c0_2, %c0_3] : memref<9x8x384xbf16, #tpu.memory_space<vmem>>, vector<1x8x384xbf16>
    %3 = vector.shape_cast %2 : vector<1x8x384xbf16> to vector<8x384xbf16>
    %c0_4 = arith.constant 0 : index
    %c0_5 = arith.constant 0 : index
    %4 = vector.load %arg2[%c0_4, %c0_5] : memref<384x128xbf16, #tpu.memory_space<vmem>>, vector<384x128xbf16>
    %cst_6 = arith.constant dense<0.000000e+00> : vector<8x128xf32>
    %5 = tpu.matmul %3, %4, %cst_6 {dimension_numbers = #tpu.dot_dimension_numbers<[1], [0], [0], [1], [0, 0, 1, 1], [], []>} : vector<8x384xbf16>, vector<384x128xbf16>, vector<8x128xf32> -> vector<8x128xf32>
    %cst_7 = arith.constant 0.000000e+00 : f32
    %6 = vector.broadcast %cst_7 : f32 to vector<8x128xf32>
    %7 = arith.maximumf %5, %6 : vector<8x128xf32>
    %c0_8 = arith.constant 0 : index
    %c0_9 = arith.constant 0 : index
    %8 = vector.load %arg3[%c0_8, %c0_9] : memref<128x128xf32, #tpu.memory_space<vmem>>, vector<128x128xf32>
    %cst_10 = arith.constant dense<0.000000e+00> : vector<8x128xf32>
    %9 = tpu.matmul %7, %8, %cst_10 {dimension_numbers = #tpu.dot_dimension_numbers<[1], [0], [0], [1], [0, 0, 1, 1], [], []>} : vector<8x128xf32>, vector<128x128xf32>, vector<8x128xf32> -> vector<8x128xf32>
    %10 = vector.broadcast %0 : vector<1x128xf32> to vector<8x128xf32>
    %11 = arith.addf %9, %10 : vector<8x128xf32>
    %c0_11 = arith.constant 0 : index
    %c0_12 = arith.constant 0 : index
    %c0_13 = arith.constant 0 : index
    %12 = vector.load %arg4[%c0_11, %c0_12, %c0_13] : memref<9x128x160xf32, #tpu.memory_space<vmem>>, vector<1x128x160xf32>
    %13 = vector.shape_cast %12 : vector<1x128x160xf32> to vector<128x160xf32>
    %cst_14 = arith.constant dense<0.000000e+00> : vector<8x160xf32>
    %14 = tpu.matmul %11, %13, %cst_14 {dimension_numbers = #tpu.dot_dimension_numbers<[1], [0], [0], [1], [0, 0, 1, 1], [], []>} : vector<8x128xf32>, vector<128x160xf32>, vector<8x160xf32> -> vector<8x160xf32>
    %15 = arith.addf %1, %14 : vector<8x160xf32>
    %c1 = arith.constant 1 : index
    %c0_15 = arith.constant 0 : index
    %c0_16 = arith.constant 0 : index
    %16 = vector.load %arg1[%c1, %c0_15, %c0_16] : memref<9x8x384xbf16, #tpu.memory_space<vmem>>, vector<1x8x384xbf16>
    %17 = vector.shape_cast %16 : vector<1x8x384xbf16> to vector<8x384xbf16>
    %c0_17 = arith.constant 0 : index
    %c0_18 = arith.constant 0 : index
    %18 = vector.load %arg2[%c0_17, %c0_18] : memref<384x128xbf16, #tpu.memory_space<vmem>>, vector<384x128xbf16>
    %cst_19 = arith.constant dense<0.000000e+00> : vector<8x128xf32>
    %19 = tpu.matmul %17, %18, %cst_19 {dimension_numbers = #tpu.dot_dimension_numbers<[1], [0], [0], [1], [0, 0, 1, 1], [], []>} : vector<8x384xbf16>, vector<384x128xbf16>, vector<8x128xf32> -> vector<8x128xf32>
    %cst_20 = arith.constant 0.000000e+00 : f32
    %20 = vector.broadcast %cst_20 : f32 to vector<8x128xf32>
    %21 = arith.maximumf %19, %20 : vector<8x128xf32>
    %c0_21 = arith.constant 0 : index
    %c0_22 = arith.constant 0 : index
    %22 = vector.load %arg3[%c0_21, %c0_22] : memref<128x128xf32, #tpu.memory_space<vmem>>, vector<128x128xf32>
    %cst_23 = arith.constant dense<0.000000e+00> : vector<8x128xf32>
    %23 = tpu.matmul %21, %22, %cst_23 {dimension_numbers = #tpu.dot_dimension_numbers<[1], [0], [0], [1], [0, 0, 1, 1], [], []>} : vector<8x128xf32>, vector<128x128xf32>, vector<8x128xf32> -> vector<8x128xf32>
    %24 = vector.broadcast %0 : vector<1x128xf32> to vector<8x128xf32>
    %25 = arith.addf %23, %24 : vector<8x128xf32>
    %c1_24 = arith.constant 1 : index
    %c0_25 = arith.constant 0 : index
    %c0_26 = arith.constant 0 : index
    %26 = vector.load %arg4[%c1_24, %c0_25, %c0_26] : memref<9x128x160xf32, #tpu.memory_space<vmem>>, vector<1x128x160xf32>
    %27 = vector.shape_cast %26 : vector<1x128x160xf32> to vector<128x160xf32>
    %cst_27 = arith.constant dense<0.000000e+00> : vector<8x160xf32>
    %28 = tpu.matmul %25, %27, %cst_27 {dimension_numbers = #tpu.dot_dimension_numbers<[1], [0], [0], [1], [0, 0, 1, 1], [], []>} : vector<8x128xf32>, vector<128x160xf32>, vector<8x160xf32> -> vector<8x160xf32>
    %29 = arith.addf %15, %28 : vector<8x160xf32>
    %c2 = arith.constant 2 : index
    %c0_28 = arith.constant 0 : index
    %c0_29 = arith.constant 0 : index
    %30 = vector.load %arg1[%c2, %c0_28, %c0_29] : memref<9x8x384xbf16, #tpu.memory_space<vmem>>, vector<1x8x384xbf16>
    %31 = vector.shape_cast %30 : vector<1x8x384xbf16> to vector<8x384xbf16>
    %c0_30 = arith.constant 0 : index
    %c0_31 = arith.constant 0 : index
    %32 = vector.load %arg2[%c0_30, %c0_31] : memref<384x128xbf16, #tpu.memory_space<vmem>>, vector<384x128xbf16>
    %cst_32 = arith.constant dense<0.000000e+00> : vector<8x128xf32>
    %33 = tpu.matmul %31, %32, %cst_32 {dimension_numbers = #tpu.dot_dimension_numbers<[1], [0], [0], [1], [0, 0, 1, 1], [], []>} : vector<8x384xbf16>, vector<384x128xbf16>, vector<8x128xf32> -> vector<8x128xf32>
    %cst_33 = arith.constant 0.000000e+00 : f32
    %34 = vector.broadcast %cst_33 : f32 to vector<8x128xf32>
    %35 = arith.maximumf %33, %34 : vector<8x128xf32>
    %c0_34 = arith.constant 0 : index
    %c0_35 = arith.constant 0 : index
    %36 = vector.load %arg3[%c0_34, %c0_35] : memref<128x128xf32, #tpu.memory_space<vmem>>, vector<128x128xf32>
    %cst_36 = arith.constant dense<0.000000e+00> : vector<8x128xf32>
    %37 = tpu.matmul %35, %36, %cst_36 {dimension_numbers = #tpu.dot_dimension_numbers<[1], [0], [0], [1], [0, 0, 1, 1], [], []>} : vector<8x128xf32>, vector<128x128xf32>, vector<8x128xf32> -> vector<8x128xf32>
    %38 = vector.broadcast %0 : vector<1x128xf32> to vector<8x128xf32>
    %39 = arith.addf %37, %38 : vector<8x128xf32>
    %c2_37 = arith.constant 2 : index
    %c0_38 = arith.constant 0 : index
    %c0_39 = arith.constant 0 : index
    %40 = vector.load %arg4[%c2_37, %c0_38, %c0_39] : memref<9x128x160xf32, #tpu.memory_space<vmem>>, vector<1x128x160xf32>
    %41 = vector.shape_cast %40 : vector<1x128x160xf32> to vector<128x160xf32>
    %cst_40 = arith.constant dense<0.000000e+00> : vector<8x160xf32>
    %42 = tpu.matmul %39, %41, %cst_40 {dimension_numbers = #tpu.dot_dimension_numbers<[1], [0], [0], [1], [0, 0, 1, 1], [], []>} : vector<8x128xf32>, vector<128x160xf32>, vector<8x160xf32> -> vector<8x160xf32>
    %43 = arith.addf %29, %42 : vector<8x160xf32>
    %c3 = arith.constant 3 : index
    %c0_41 = arith.constant 0 : index
    %c0_42 = arith.constant 0 : index
    %44 = vector.load %arg1[%c3, %c0_41, %c0_42] : memref<9x8x384xbf16, #tpu.memory_space<vmem>>, vector<1x8x384xbf16>
    %45 = vector.shape_cast %44 : vector<1x8x384xbf16> to vector<8x384xbf16>
    %c0_43 = arith.constant 0 : index
    %c0_44 = arith.constant 0 : index
    %46 = vector.load %arg2[%c0_43, %c0_44] : memref<384x128xbf16, #tpu.memory_space<vmem>>, vector<384x128xbf16>
    %cst_45 = arith.constant dense<0.000000e+00> : vector<8x128xf32>
    %47 = tpu.matmul %45, %46, %cst_45 {dimension_numbers = #tpu.dot_dimension_numbers<[1], [0], [0], [1], [0, 0, 1, 1], [], []>} : vector<8x384xbf16>, vector<384x128xbf16>, vector<8x128xf32> -> vector<8x128xf32>
    %cst_46 = arith.constant 0.000000e+00 : f32
    %48 = vector.broadcast %cst_46 : f32 to vector<8x128xf32>
    %49 = arith.maximumf %47, %48 : vector<8x128xf32>
    %c0_47 = arith.constant 0 : index
    %c0_48 = arith.constant 0 : index
    %50 = vector.load %arg3[%c0_47, %c0_48] : memref<128x128xf32, #tpu.memory_space<vmem>>, vector<128x128xf32>
    %cst_49 = arith.constant dense<0.000000e+00> : vector<8x128xf32>
    %51 = tpu.matmul %49, %50, %cst_49 {dimension_numbers = #tpu.dot_dimension_numbers<[1], [0], [0], [1], [0, 0, 1, 1], [], []>} : vector<8x128xf32>, vector<128x128xf32>, vector<8x128xf32> -> vector<8x128xf32>
    %52 = vector.broadcast %0 : vector<1x128xf32> to vector<8x128xf32>
    %53 = arith.addf %51, %52 : vector<8x128xf32>
    %c3_50 = arith.constant 3 : index
    %c0_51 = arith.constant 0 : index
    %c0_52 = arith.constant 0 : index
    %54 = vector.load %arg4[%c3_50, %c0_51, %c0_52] : memref<9x128x160xf32, #tpu.memory_space<vmem>>, vector<1x128x160xf32>
    %55 = vector.shape_cast %54 : vector<1x128x160xf32> to vector<128x160xf32>
    %cst_53 = arith.constant dense<0.000000e+00> : vector<8x160xf32>
    %56 = tpu.matmul %53, %55, %cst_53 {dimension_numbers = #tpu.dot_dimension_numbers<[1], [0], [0], [1], [0, 0, 1, 1], [], []>} : vector<8x128xf32>, vector<128x160xf32>, vector<8x160xf32> -> vector<8x160xf32>
    %57 = arith.addf %43, %56 : vector<8x160xf32>
    %c4 = arith.constant 4 : index
    %c0_54 = arith.constant 0 : index
    %c0_55 = arith.constant 0 : index
    %58 = vector.load %arg1[%c4, %c0_54, %c0_55] : memref<9x8x384xbf16, #tpu.memory_space<vmem>>, vector<1x8x384xbf16>
    %59 = vector.shape_cast %58 : vector<1x8x384xbf16> to vector<8x384xbf16>
    %c0_56 = arith.constant 0 : index
    %c0_57 = arith.constant 0 : index
    %60 = vector.load %arg2[%c0_56, %c0_57] : memref<384x128xbf16, #tpu.memory_space<vmem>>, vector<384x128xbf16>
    %cst_58 = arith.constant dense<0.000000e+00> : vector<8x128xf32>
    %61 = tpu.matmul %59, %60, %cst_58 {dimension_numbers = #tpu.dot_dimension_numbers<[1], [0], [0], [1], [0, 0, 1, 1], [], []>} : vector<8x384xbf16>, vector<384x128xbf16>, vector<8x128xf32> -> vector<8x128xf32>
    %cst_59 = arith.constant 0.000000e+00 : f32
    %62 = vector.broadcast %cst_59 : f32 to vector<8x128xf32>
    %63 = arith.maximumf %61, %62 : vector<8x128xf32>
    %c0_60 = arith.constant 0 : index
    %c0_61 = arith.constant 0 : index
    %64 = vector.load %arg3[%c0_60, %c0_61] : memref<128x128xf32, #tpu.memory_space<vmem>>, vector<128x128xf32>
    %cst_62 = arith.constant dense<0.000000e+00> : vector<8x128xf32>
    %65 = tpu.matmul %63, %64, %cst_62 {dimension_numbers = #tpu.dot_dimension_numbers<[1], [0], [0], [1], [0, 0, 1, 1], [], []>} : vector<8x128xf32>, vector<128x128xf32>, vector<8x128xf32> -> vector<8x128xf32>
    %66 = vector.broadcast %0 : vector<1x128xf32> to vector<8x128xf32>
    %67 = arith.addf %65, %66 : vector<8x128xf32>
    %c4_63 = arith.constant 4 : index
    %c0_64 = arith.constant 0 : index
    %c0_65 = arith.constant 0 : index
    %68 = vector.load %arg4[%c4_63, %c0_64, %c0_65] : memref<9x128x160xf32, #tpu.memory_space<vmem>>, vector<1x128x160xf32>
    %69 = vector.shape_cast %68 : vector<1x128x160xf32> to vector<128x160xf32>
    %cst_66 = arith.constant dense<0.000000e+00> : vector<8x160xf32>
    %70 = tpu.matmul %67, %69, %cst_66 {dimension_numbers = #tpu.dot_dimension_numbers<[1], [0], [0], [1], [0, 0, 1, 1], [], []>} : vector<8x128xf32>, vector<128x160xf32>, vector<8x160xf32> -> vector<8x160xf32>
    %71 = arith.addf %57, %70 : vector<8x160xf32>
    %c5 = arith.constant 5 : index
    %c0_67 = arith.constant 0 : index
    %c0_68 = arith.constant 0 : index
    %72 = vector.load %arg1[%c5, %c0_67, %c0_68] : memref<9x8x384xbf16, #tpu.memory_space<vmem>>, vector<1x8x384xbf16>
    %73 = vector.shape_cast %72 : vector<1x8x384xbf16> to vector<8x384xbf16>
    %c0_69 = arith.constant 0 : index
    %c0_70 = arith.constant 0 : index
    %74 = vector.load %arg2[%c0_69, %c0_70] : memref<384x128xbf16, #tpu.memory_space<vmem>>, vector<384x128xbf16>
    %cst_71 = arith.constant dense<0.000000e+00> : vector<8x128xf32>
    %75 = tpu.matmul %73, %74, %cst_71 {dimension_numbers = #tpu.dot_dimension_numbers<[1], [0], [0], [1], [0, 0, 1, 1], [], []>} : vector<8x384xbf16>, vector<384x128xbf16>, vector<8x128xf32> -> vector<8x128xf32>
    %cst_72 = arith.constant 0.000000e+00 : f32
    %76 = vector.broadcast %cst_72 : f32 to vector<8x128xf32>
    %77 = arith.maximumf %75, %76 : vector<8x128xf32>
    %c0_73 = arith.constant 0 : index
    %c0_74 = arith.constant 0 : index
    %78 = vector.load %arg3[%c0_73, %c0_74] : memref<128x128xf32, #tpu.memory_space<vmem>>, vector<128x128xf32>
    %cst_75 = arith.constant dense<0.000000e+00> : vector<8x128xf32>
    %79 = tpu.matmul %77, %78, %cst_75 {dimension_numbers = #tpu.dot_dimension_numbers<[1], [0], [0], [1], [0, 0, 1, 1], [], []>} : vector<8x128xf32>, vector<128x128xf32>, vector<8x128xf32> -> vector<8x128xf32>
    %80 = vector.broadcast %0 : vector<1x128xf32> to vector<8x128xf32>
    %81 = arith.addf %79, %80 : vector<8x128xf32>
    %c5_76 = arith.constant 5 : index
    %c0_77 = arith.constant 0 : index
    %c0_78 = arith.constant 0 : index
    %82 = vector.load %arg4[%c5_76, %c0_77, %c0_78] : memref<9x128x160xf32, #tpu.memory_space<vmem>>, vector<1x128x160xf32>
    %83 = vector.shape_cast %82 : vector<1x128x160xf32> to vector<128x160xf32>
    %cst_79 = arith.constant dense<0.000000e+00> : vector<8x160xf32>
    %84 = tpu.matmul %81, %83, %cst_79 {dimension_numbers = #tpu.dot_dimension_numbers<[1], [0], [0], [1], [0, 0, 1, 1], [], []>} : vector<8x128xf32>, vector<128x160xf32>, vector<8x160xf32> -> vector<8x160xf32>
    %85 = arith.addf %71, %84 : vector<8x160xf32>
    %c6 = arith.constant 6 : index
    %c0_80 = arith.constant 0 : index
    %c0_81 = arith.constant 0 : index
    %86 = vector.load %arg1[%c6, %c0_80, %c0_81] : memref<9x8x384xbf16, #tpu.memory_space<vmem>>, vector<1x8x384xbf16>
    %87 = vector.shape_cast %86 : vector<1x8x384xbf16> to vector<8x384xbf16>
    %c0_82 = arith.constant 0 : index
    %c0_83 = arith.constant 0 : index
    %88 = vector.load %arg2[%c0_82, %c0_83] : memref<384x128xbf16, #tpu.memory_space<vmem>>, vector<384x128xbf16>
    %cst_84 = arith.constant dense<0.000000e+00> : vector<8x128xf32>
    %89 = tpu.matmul %87, %88, %cst_84 {dimension_numbers = #tpu.dot_dimension_numbers<[1], [0], [0], [1], [0, 0, 1, 1], [], []>} : vector<8x384xbf16>, vector<384x128xbf16>, vector<8x128xf32> -> vector<8x128xf32>
    %cst_85 = arith.constant 0.000000e+00 : f32
    %90 = vector.broadcast %cst_85 : f32 to vector<8x128xf32>
    %91 = arith.maximumf %89, %90 : vector<8x128xf32>
    %c0_86 = arith.constant 0 : index
    %c0_87 = arith.constant 0 : index
    %92 = vector.load %arg3[%c0_86, %c0_87] : memref<128x128xf32, #tpu.memory_space<vmem>>, vector<128x128xf32>
    %cst_88 = arith.constant dense<0.000000e+00> : vector<8x128xf32>
    %93 = tpu.matmul %91, %92, %cst_88 {dimension_numbers = #tpu.dot_dimension_numbers<[1], [0], [0], [1], [0, 0, 1, 1], [], []>} : vector<8x128xf32>, vector<128x128xf32>, vector<8x128xf32> -> vector<8x128xf32>
    %94 = vector.broadcast %0 : vector<1x128xf32> to vector<8x128xf32>
    %95 = arith.addf %93, %94 : vector<8x128xf32>
    %c6_89 = arith.constant 6 : index
    %c0_90 = arith.constant 0 : index
    %c0_91 = arith.constant 0 : index
    %96 = vector.load %arg4[%c6_89, %c0_90, %c0_91] : memref<9x128x160xf32, #tpu.memory_space<vmem>>, vector<1x128x160xf32>
    %97 = vector.shape_cast %96 : vector<1x128x160xf32> to vector<128x160xf32>
    %cst_92 = arith.constant dense<0.000000e+00> : vector<8x160xf32>
    %98 = tpu.matmul %95, %97, %cst_92 {dimension_numbers = #tpu.dot_dimension_numbers<[1], [0], [0], [1], [0, 0, 1, 1], [], []>} : vector<8x128xf32>, vector<128x160xf32>, vector<8x160xf32> -> vector<8x160xf32>
    %99 = arith.addf %85, %98 : vector<8x160xf32>
    %c7 = arith.constant 7 : index
    %c0_93 = arith.constant 0 : index
    %c0_94 = arith.constant 0 : index
    %100 = vector.load %arg1[%c7, %c0_93, %c0_94] : memref<9x8x384xbf16, #tpu.memory_space<vmem>>, vector<1x8x384xbf16>
    %101 = vector.shape_cast %100 : vector<1x8x384xbf16> to vector<8x384xbf16>
    %c0_95 = arith.constant 0 : index
    %c0_96 = arith.constant 0 : index
    %102 = vector.load %arg2[%c0_95, %c0_96] : memref<384x128xbf16, #tpu.memory_space<vmem>>, vector<384x128xbf16>
    %cst_97 = arith.constant dense<0.000000e+00> : vector<8x128xf32>
    %103 = tpu.matmul %101, %102, %cst_97 {dimension_numbers = #tpu.dot_dimension_numbers<[1], [0], [0], [1], [0, 0, 1, 1], [], []>} : vector<8x384xbf16>, vector<384x128xbf16>, vector<8x128xf32> -> vector<8x128xf32>
    %cst_98 = arith.constant 0.000000e+00 : f32
    %104 = vector.broadcast %cst_98 : f32 to vector<8x128xf32>
    %105 = arith.maximumf %103, %104 : vector<8x128xf32>
    %c0_99 = arith.constant 0 : index
    %c0_100 = arith.constant 0 : index
    %106 = vector.load %arg3[%c0_99, %c0_100] : memref<128x128xf32, #tpu.memory_space<vmem>>, vector<128x128xf32>
    %cst_101 = arith.constant dense<0.000000e+00> : vector<8x128xf32>
    %107 = tpu.matmul %105, %106, %cst_101 {dimension_numbers = #tpu.dot_dimension_numbers<[1], [0], [0], [1], [0, 0, 1, 1], [], []>} : vector<8x128xf32>, vector<128x128xf32>, vector<8x128xf32> -> vector<8x128xf32>
    %108 = vector.broadcast %0 : vector<1x128xf32> to vector<8x128xf32>
    %109 = arith.addf %107, %108 : vector<8x128xf32>
    %c7_102 = arith.constant 7 : index
    %c0_103 = arith.constant 0 : index
    %c0_104 = arith.constant 0 : index
    %110 = vector.load %arg4[%c7_102, %c0_103, %c0_104] : memref<9x128x160xf32, #tpu.memory_space<vmem>>, vector<1x128x160xf32>
    %111 = vector.shape_cast %110 : vector<1x128x160xf32> to vector<128x160xf32>
    %cst_105 = arith.constant dense<0.000000e+00> : vector<8x160xf32>
    %112 = tpu.matmul %109, %111, %cst_105 {dimension_numbers = #tpu.dot_dimension_numbers<[1], [0], [0], [1], [0, 0, 1, 1], [], []>} : vector<8x128xf32>, vector<128x160xf32>, vector<8x160xf32> -> vector<8x160xf32>
    %113 = arith.addf %99, %112 : vector<8x160xf32>
    %c8 = arith.constant 8 : index
    %c0_106 = arith.constant 0 : index
    %c0_107 = arith.constant 0 : index
    %114 = vector.load %arg1[%c8, %c0_106, %c0_107] : memref<9x8x384xbf16, #tpu.memory_space<vmem>>, vector<1x8x384xbf16>
    %115 = vector.shape_cast %114 : vector<1x8x384xbf16> to vector<8x384xbf16>
    %c0_108 = arith.constant 0 : index
    %c0_109 = arith.constant 0 : index
    %116 = vector.load %arg2[%c0_108, %c0_109] : memref<384x128xbf16, #tpu.memory_space<vmem>>, vector<384x128xbf16>
    %cst_110 = arith.constant dense<0.000000e+00> : vector<8x128xf32>
    %117 = tpu.matmul %115, %116, %cst_110 {dimension_numbers = #tpu.dot_dimension_numbers<[1], [0], [0], [1], [0, 0, 1, 1], [], []>} : vector<8x384xbf16>, vector<384x128xbf16>, vector<8x128xf32> -> vector<8x128xf32>
    %cst_111 = arith.constant 0.000000e+00 : f32
    %118 = vector.broadcast %cst_111 : f32 to vector<8x128xf32>
    %119 = arith.maximumf %117, %118 : vector<8x128xf32>
    %c0_112 = arith.constant 0 : index
    %c0_113 = arith.constant 0 : index
    %120 = vector.load %arg3[%c0_112, %c0_113] : memref<128x128xf32, #tpu.memory_space<vmem>>, vector<128x128xf32>
    %cst_114 = arith.constant dense<0.000000e+00> : vector<8x128xf32>
    %121 = tpu.matmul %119, %120, %cst_114 {dimension_numbers = #tpu.dot_dimension_numbers<[1], [0], [0], [1], [0, 0, 1, 1], [], []>} : vector<8x128xf32>, vector<128x128xf32>, vector<8x128xf32> -> vector<8x128xf32>
    %122 = vector.broadcast %0 : vector<1x128xf32> to vector<8x128xf32>
    %123 = arith.addf %121, %122 : vector<8x128xf32>
    %c8_115 = arith.constant 8 : index
    %c0_116 = arith.constant 0 : index
    %c0_117 = arith.constant 0 : index
    %124 = vector.load %arg4[%c8_115, %c0_116, %c0_117] : memref<9x128x160xf32, #tpu.memory_space<vmem>>, vector<1x128x160xf32>
    %125 = vector.shape_cast %124 : vector<1x128x160xf32> to vector<128x160xf32>
    %cst_118 = arith.constant dense<0.000000e+00> : vector<8x160xf32>
    %126 = tpu.matmul %123, %125, %cst_118 {dimension_numbers = #tpu.dot_dimension_numbers<[1], [0], [0], [1], [0, 0, 1, 1], [], []>} : vector<8x128xf32>, vector<128x160xf32>, vector<8x160xf32> -> vector<8x160xf32>
    %127 = arith.addf %113, %126 : vector<8x160xf32>
    %c1_119 = arith.constant 1 : index
    %c0_120 = arith.constant 0 : index
    %128 = vector.load %arg7[%c1_119, %c0_120] : memref<4x160xf32, #tpu.memory_space<vmem>>, vector<1x160xf32>
    %129 = vector.broadcast %128 : vector<1x160xf32> to vector<8x160xf32>
    %130 = arith.addf %127, %129 : vector<8x160xf32>
    %cst_121 = arith.constant 0.000000e+00 : f32
    %131 = vector.broadcast %cst_121 : f32 to vector<8x160xf32>
    %132 = arith.maximumf %130, %131 : vector<8x160xf32>
    %c0_122 = arith.constant 0 : index
    %c0_123 = arith.constant 0 : index
    %133 = vector.load %arg5[%c0_122, %c0_123] : memref<160x160xf32, #tpu.memory_space<vmem>>, vector<160x160xf32>
    %cst_124 = arith.constant dense<0.000000e+00> : vector<8x160xf32>
    %134 = tpu.matmul %132, %133, %cst_124 {dimension_numbers = #tpu.dot_dimension_numbers<[1], [0], [0], [1], [0, 0, 1, 1], [], []>} : vector<8x160xf32>, vector<160x160xf32>, vector<8x160xf32> -> vector<8x160xf32>
    %c2_125 = arith.constant 2 : index
    %c0_126 = arith.constant 0 : index
    %135 = vector.load %arg7[%c2_125, %c0_126] : memref<4x160xf32, #tpu.memory_space<vmem>>, vector<1x160xf32>
    %136 = vector.broadcast %135 : vector<1x160xf32> to vector<8x160xf32>
    %137 = arith.addf %134, %136 : vector<8x160xf32>
    %cst_127 = arith.constant 0.000000e+00 : f32
    %138 = vector.broadcast %cst_127 : f32 to vector<8x160xf32>
    %139 = arith.maximumf %137, %138 : vector<8x160xf32>
    %c0_128 = arith.constant 0 : index
    %c0_129 = arith.constant 0 : index
    %140 = vector.load %arg6[%c0_128, %c0_129] : memref<160x16xf32, #tpu.memory_space<vmem>>, vector<160x16xf32>
    %cst_130 = arith.constant dense<0.000000e+00> : vector<8x16xf32>
    %141 = tpu.matmul %139, %140, %cst_130 {dimension_numbers = #tpu.dot_dimension_numbers<[1], [0], [0], [1], [0, 0, 1, 1], [], []>} : vector<8x160xf32>, vector<160x16xf32>, vector<8x16xf32> -> vector<8x16xf32>
    %c3_131 = arith.constant 3 : index
    %c0_132 = arith.constant 0 : index
    %142 = vector.load %arg7[%c3_131, %c0_132] : memref<4x160xf32, #tpu.memory_space<vmem>>, vector<1x16xf32>
    %143 = vector.broadcast %142 : vector<1x16xf32> to vector<8x16xf32>
    %144 = arith.addf %141, %143 : vector<8x16xf32>
    %c0_133 = arith.constant 0 : index
    %c0_134 = arith.constant 0 : index
    %145 = vector.load %arg8[%c0_133, %c0_134] : memref<8x16xf32, #tpu.memory_space<vmem>>, vector<8x16xf32>
    tpu.vector_store %arg8[%c0_133, %c0_134], %144 {strides = array<i32>} : memref<8x16xf32, #tpu.memory_space<vmem>>, vector<8x16xf32>,
    return
  }
  func.func @transform_0(%arg0: i32) -> (i32, i32, i32) {
    %c0_i32 = arith.constant 0 : i32
    %c0_i32_0 = arith.constant 0 : i32
    %c0_i32_1 = arith.constant 0 : i32
    return %c0_i32, %arg0, %c0_i32_0 : i32, i32, i32
  }
  func.func @transform_1(%arg0: i32) -> (i32, i32) {
    %c0_i32 = arith.constant 0 : i32
    %c0_i32_0 = arith.constant 0 : i32
    %c0_i32_1 = arith.constant 0 : i32
    return %c0_i32, %c0_i32_0 : i32, i32
  }
  func.func @transform_2(%arg0: i32) -> (i32, i32) {
    %c0_i32 = arith.constant 0 : i32
    %c0_i32_0 = arith.constant 0 : i32
    %c0_i32_1 = arith.constant 0 : i32
    return %c0_i32, %c0_i32_0 : i32, i32
  }
  func.func @transform_3(%arg0: i32) -> (i32, i32, i32) {
    %c0_i32 = arith.constant 0 : i32
    %c0_i32_0 = arith.constant 0 : i32
    %c0_i32_1 = arith.constant 0 : i32
    %c0_i32_2 = arith.constant 0 : i32
    return %c0_i32, %c0_i32_0, %c0_i32_1 : i32, i32, i32
  }
  func.func @transform_4(%arg0: i32) -> (i32, i32) {
    %c0_i32 = arith.constant 0 : i32
    %c0_i32_0 = arith.constant 0 : i32
    %c0_i32_1 = arith.constant 0 : i32
    return %c0_i32, %c0_i32_0 : i32, i32
  }
  func.func @transform_5(%arg0: i32) -> (i32, i32) {
    %c0_i32 = arith.constant 0 : i32
    %c0_i32_0 = arith.constant 0 : i32
    %c0_i32_1 = arith.constant 0 : i32
    return %c0_i32, %c0_i32_0 : i32, i32
  }
  func.func @transform_6(%arg0: i32) -> (i32, i32) {
    %c0_i32 = arith.constant 0 : i32
    %c0_i32_0 = arith.constant 0 : i32
    %c0_i32_1 = arith.constant 0 : i32
    return %c0_i32, %c0_i32_0 : i32, i32
  }
  func.func @transform_7(%arg0: i32) -> (i32, i32) {
    %c0_i32 = arith.constant 0 : i32
    %c0_i32_0 = arith.constant 0 : i32
    return %arg0, %c0_i32 : i32, i32
  }
}

</mosaic_0001>

<bundles_post_ra>
// kernel: _lambda_.1
= control target key start
LH: loop header
LB: loop body
LE: loop exit
PB: predicated region body
PF: predicated region fallthrough
CT: control target
= control target key end

     0   :  { %vm1629_vm0 = vcmask 261120   ;;  %vm1780_vm1 = vcmask 130048   ;;  %s4266_s1 = inlined_call_operand.vmem [shape: bf16[384,128], index: 1, kind: input, shape index: {}]   ;;  %s4267_s0 = inlined_call_operand.vmem [shape: bf16[9,8,384], index: 0, kind: input, shape index: {}]   ;;  %s4268_s2 = inlined_call_operand.vmem [shape: f32[128,128], index: 2, kind: input, shape index: {}]   ;;  %s4269_s6 = inlined_call_operand.vmem [shape: f32[4,160], index: 6, kind: input, shape index: {}]   ;;  %s4270_s3 = inlined_call_operand.vmem [shape: f32[9,128,160], index: 3, kind: input, shape index: {}]   ;;  %s4271_s4 = inlined_call_operand.vmem [shape: f32[160,160], index: 4, kind: input, shape index: {}]   ;;  %s4272_s5 = inlined_call_operand.vmem [shape: f32[160,16], index: 5, kind: input, shape index: {}]   ;;  %s4273_s7 = inlined_call_operand.vmem [shape: f32[8,16], index: 7, kind: output, shape index: {}]  }
   0x1   :  { %v2287_v0 = vld [vmem:[%s4266_s1 + $0x38] sm:$0xff]  ;;  %v2304_v3 = vld [vmem:[%s4266_s1 + $0x30] sm:$0xff]  ;;  %v2322_v6 = vld [vmem:[%s4266_s1 + $0x28] sm:$0xff] }
   0x2   :  { %v2292_v1 = vld [vmem:[%s4266_s1 + $0x78] sm:$0xff]  ;;  %232 = vmatpush.bf16.msra.mxu0 %v2287_v0  ;;  %v2309_v4 = vld [vmem:[%s4266_s1 + $0x70] sm:$0xff]  ;;  %v2327_v7 = vld [vmem:[%s4266_s1 + $0x68] sm:$0xff] }
   0x3   :  { %v2297_v2 = vld [vmem:[%s4266_s1 + $0xb8] sm:$0xff]  ;;  %245 = vmatpush.bf16.msra.mxu1 %v2292_v1  ;;  %v2315_v5 = vld [vmem:[%s4266_s1 + $0xb0] sm:$0xff]  ;;  %v2333_v8 = vld [vmem:[%s4266_s1 + $0xa8] sm:$0xff] }
   0x4   :  { %258 = vmatpush.bf16.msra.mxu2 %v2297_v2  ;;  %v2340_v9 = vld [vmem:[%s4266_s1 + $0x20] sm:$0xff]  ;;  %v2358_v12 = vld [vmem:[%s4266_s1 + $0x18] sm:$0xff]  ;;  %v2376_v15 = vld [vmem:[%s4266_s1 + $0x10] sm:$0xff] }
   0x5   :  { %v2345_v10 = vld [vmem:[%s4266_s1 + $0x60] sm:$0xff]  ;;  %v2363_v13 = vld [vmem:[%s4266_s1 + $0x58] sm:$0xff]  ;;  %v2381_v16 = vld [vmem:[%s4266_s1 + $0x50] sm:$0xff] }
   0x6   :  { %233 = vmatpush.bf16.msra.mxu0 %v2304_v3  ;;  %v2351_v11 = vld [vmem:[%s4266_s1 + $0xa0] sm:$0xff]  ;;  %v2369_v14 = vld [vmem:[%s4266_s1 + $0x98] sm:$0xff]  ;;  %v2387_v17 = vld [vmem:[%s4266_s1 + $0x90] sm:$0xff] }
   0x7   :  { %246 = vmatpush.bf16.msra.mxu1 %v2309_v4  ;;  %v2394_v18 = vld [vmem:[%s4266_s1 + $0x8] sm:$0xff]  ;;  %v27_v20 = vld [vmem:[%s4267_s0] sm:$0xff]  ;;  %v2438_v32 = vld [vmem:[%s4268_s2 + $0x78] sm:$0xff] }
   0x8   :  { %259 = vmatpush.bf16.msra.mxu2 %v2315_v5  ;;  %v2399_v19 = vld [vmem:[%s4266_s1 + $0x48] sm:$0xff]  ;;  %v79_v23 = vunpack.c.l.b16 %v27_v20  ;;  %v80_v24 = vunpack.c.h.b16 %v27_v20  ;;  %v2418_v25 = vld [vmem:[%s4266_s1] sm:$0xff]  ;;  %289 = vmatpush.msra.mxu3 %v2438_v32  ;;  %v2446_v33 = vld [vmem:[%s4268_s2 + $0x70] sm:$0xff] }
   0x9   :  { %v2408_v21 = vld [vmem:[%s4266_s1 + $0x88] sm:$0xff]  ;;  %v2423_v26 = vld [vmem:[%s4266_s1 + $0x40] sm:$0xff]  ;;  %v2469_v36 = vld [vmem:[%s4268_s2 + $0x58] sm:$0xff] }
   0xa   :  { %234 = vmatpush.bf16.msra.mxu0 %v2322_v6  ;;  %v28_v22 = vld [vmem:[%s4267_s0 + $0x8] sm:$0xf]  ;;  %v2429_v28 = vld [vmem:[%s4266_s1 + $0x80] sm:$0xff]  ;;  %v82_v29 = vpack.c.b16 %v79_v23, %v79_v23  ;;  %v83_v30 = vpack.c.b16 %v80_v24, %v80_v24  ;;  %290 = vmatpush.msra.mxu3 %v2446_v33  ;;  %v2475_v37 = vld [vmem:[%s4268_s2 + $0x50] sm:$0xff] }
   0xb   :  { %247 = vmatpush.bf16.msra.mxu1 %v2327_v7  ;;  %v81_v27 = vunpack.c.l.b16 %v28_v22  ;;  %v2454_v34 = vld [vmem:[%s4268_s2 + $0x68] sm:$0xff]  ;;  %v2460_v35 = vld [vmem:[%s4268_s2 + $0x60] sm:$0xff]  ;;  %v2499_v40 = vld [vmem:[%s4268_s2 + $0x38] sm:$0xff] }
   0xc   :  { %260 = vmatpush.bf16.msra.mxu2 %v2333_v8  ;;  %291 = vmatpush.msra.mxu3 %v2454_v34  ;;  %v2484_v38 = vld [vmem:[%s4268_s2 + $0x48] sm:$0xff]  ;;  %v2490_v39 = vld [vmem:[%s4268_s2 + $0x40] sm:$0xff]  ;;  %v2505_v41 = vld [vmem:[%s4268_s2 + $0x30] sm:$0xff] }
   0xd   :  { %v84_v31 = vpack.c.b16 %v81_v27, %v81_v27  ;;  %v1882_v42 = vld [vmem:[%s4267_s0 + $0xc] sm:$0xff]  ;;  %v1883_v43 = vld [vmem:[%s4267_s0 + $0x14] sm:$0xf]  ;;  %v2526_v46 = vld [vmem:[%s4268_s2 + $0x20] sm:$0xff] }
   0xe   :  { %235 = vmatpush.bf16.msra.mxu0 %v2340_v9  ;;  %292 = vmatpush.msra.mxu3 %v2460_v35  ;;  %v2520_v44 = vld [vmem:[%s4268_s2 + $0x28] sm:$0xff]  ;;  %v346_v45 = vunpack.c.l.b16 %v1882_v42  ;;  %v347_v47 = vunpack.c.h.b16 %v1882_v42  ;;  %v348_v48 = vunpack.c.l.b16 %v1883_v43  ;;  %v2535_v49 = vld [vmem:[%s4268_s2 + $0x18] sm:$0xff]  ;;  %v2541_v51 = vld [vmem:[%s4268_s2 + $0x10] sm:$0xff] }
   0xf   :  { %248 = vmatpush.bf16.msra.mxu1 %v2345_v10  ;;  %v2551_v54 = vld [vmem:[%s4268_s2 + $0x8] sm:$0xff]  ;;  %v2556_v55 = vld [vmem:[%s4268_s2] sm:$0xff]  ;;  %v339_v20 = vld [vmem:[%s4270_s3 + $0xf0] sm:$0xff] }
  0x10   :  { %261 = vmatpush.bf16.msra.mxu2 %v2351_v11  ;;  %293 = vmatpush.msra.mxu3 %v2469_v36  ;;  %v349_v50 = vpack.c.b16 %v346_v45, %v346_v45  ;;  %v350_v52 = vpack.c.b16 %v347_v47, %v347_v47  ;;  %v351_v53 = vpack.c.b16 %v348_v48, %v348_v48  ;;  %v337_v22 = vld [vmem:[%s4270_s3 + $0xe0] sm:$0xff]  ;;  %v335_v23 = vld [vmem:[%s4270_s3 + $0xd0] sm:$0xff]  ;;  %v1915_v27 = vld [vmem:[%s4270_s3 + $0x1f8] sm:$0xff] }
  0x11   :  { %v1914_v24 = vld [vmem:[%s4270_s3 + $0x1f0] sm:$0xff]  ;;  %v333_v42 = vld [vmem:[%s4270_s3 + $0xc0] sm:$0xff]  ;;  %v1911_v45 = vld [vmem:[%s4270_s3 + $0x1d8] sm:$0xff] }
  0x12   :  { %236 = vmatpush.bf16.msra.mxu0 %v2358_v12  ;;  %294 = vmatpush.msra.mxu3 %v2475_v37  ;;  %v1910_v43 = vld [vmem:[%s4270_s3 + $0x1d0] sm:$0xff]  ;;  %v1908_v48 = vld [vmem:[%s4270_s3 + $0x1c0] sm:$0xff] }
  0x13   :  { %249 = vmatpush.bf16.msra.mxu1 %v2363_v13  ;;  %v331_v47 = vld [vmem:[%s4270_s3 + $0xb0] sm:$0xff] }
  0x14   :  { %262 = vmatpush.bf16.msra.mxu2 %v2369_v14  ;;  %295 = vmatpush.msra.mxu3 %v2484_v38 }
  0x16   :  { %237 = vmatpush.bf16.msra.mxu0 %v2376_v15  ;;  %296 = vmatpush.msra.mxu3 %v2490_v39 }
  0x17   :  { %250 = vmatpush.bf16.msra.mxu1 %v2381_v16 }
  0x18   :  { %263 = vmatpush.bf16.msra.mxu2 %v2387_v17  ;;  %297 = vmatpush.msra.mxu3 %v2499_v40 }
  0x1a   :  { %238 = vmatpush.bf16.msra.mxu0 %v2394_v18  ;;  %298 = vmatpush.msra.mxu3 %v2505_v41 }
  0x1b   :  { %251 = vmatpush.bf16.msra.mxu1 %v2399_v19 }
  0x1c   :  { %264 = vmatpush.bf16.msra.mxu2 %v2408_v21  ;;  %299 = vmatpush.msra.mxu3 %v2520_v44 }
  0x1e   :  { %239 = vmatpush.bf16.msra.mxu0 %v2418_v25  ;;  %300 = vmatpush.msra.mxu3 %v2526_v46 }
  0x1f   :  { %252 = vmatpush.bf16.msra.mxu1 %v2423_v26 }
  0x20   :  { %265 = vmatpush.bf16.msra.mxu2 %v2429_v28  ;;  %301 = vmatpush.msra.mxu3 %v2535_v49 }
  0x21   :  { %240 = vmatmul.bf16.vlgmr.msra.gmra.mxu0 %v82_v29 }
  0x22   :  { %355 = vmatpush.bf16.msrb.mxu0 %v2287_v0  ;;  %253 = vmatmul.bf16.vlgmr.msra.gmra.mxu1 %v83_v30  ;;  %v1912_v30 = vld [vmem:[%s4270_s3 + $0x1e0] sm:$0xff] }
  0x23   :  { %368 = vmatpush.bf16.msrb.mxu1 %v2292_v1  ;;  %266 = vmatmul.bf16.vlgmr.msra.gmra.mxu2 %v84_v31  ;;  %v1913_v31 = vld [vmem:[%s4270_s3 + $0x1e8] sm:$0xff] }
  0x24   :  { %381 = vmatpush.bf16.msrb.mxu2 %v2297_v2  ;;  %302 = vmatpush.msra.mxu3 %v2541_v51 }
  0x26   :  { %356 = vmatpush.bf16.msrb.mxu0 %v2304_v3  ;;  %303 = vmatpush.msra.mxu3 %v2551_v54 }
  0x27   :  { %369 = vmatpush.bf16.msrb.mxu1 %v2309_v4 }
  0x28   :  { %382 = vmatpush.bf16.msrb.mxu2 %v2315_v5  ;;  %304 = vmatpush.msra.mxu3 %v2556_v55 }
  0x2a   :  { %357 = vmatpush.bf16.msrb.mxu0 %v2322_v6  ;;  %395 = vmatpush.msrb.mxu3 %v2438_v32 }
  0x2b   :  { %370 = vmatpush.bf16.msrb.mxu1 %v2327_v7 }
  0x2c   :  { %383 = vmatpush.bf16.msrb.mxu2 %v2333_v8  ;;  %396 = vmatpush.msrb.mxu3 %v2446_v33 }
  0x2e   :  { %358 = vmatpush.bf16.msrb.mxu0 %v2340_v9  ;;  %397 = vmatpush.msrb.mxu3 %v2454_v34 }
  0x2f   :  { %371 = vmatpush.bf16.msrb.mxu1 %v2345_v10 }
  0x30   :  { %384 = vmatpush.bf16.msrb.mxu2 %v2351_v11  ;;  %398 = vmatpush.msrb.mxu3 %v2460_v35 }
  0x32   :  { %359 = vmatpush.bf16.msrb.mxu0 %v2358_v12  ;;  %399 = vmatpush.msrb.mxu3 %v2469_v36 }
  0x33   :  { %372 = vmatpush.bf16.msrb.mxu1 %v2363_v13 }
  0x34   :  { %385 = vmatpush.bf16.msrb.mxu2 %v2369_v14  ;;  %400 = vmatpush.msrb.mxu3 %v2475_v37 }
  0x36   :  { %360 = vmatpush.bf16.msrb.mxu0 %v2376_v15  ;;  %401 = vmatpush.msrb.mxu3 %v2484_v38 }
  0x37   :  { %373 = vmatpush.bf16.msrb.mxu1 %v2381_v16 }
  0x38   :  { %386 = vmatpush.bf16.msrb.mxu2 %v2387_v17  ;;  %402 = vmatpush.msrb.mxu3 %v2490_v39 }
  0x3a   :  { %361 = vmatpush.bf16.msrb.mxu0 %v2394_v18  ;;  %403 = vmatpush.msrb.mxu3 %v2499_v40 }
  0x3b   :  { %374 = vmatpush.bf16.msrb.mxu1 %v2399_v19 }
  0x3c   :  { %387 = vmatpush.bf16.msrb.mxu2 %v2408_v21  ;;  %404 = vmatpush.msrb.mxu3 %v2505_v41 }
  0x3e   :  { %362 = vmatpush.bf16.msrb.mxu0 %v2418_v25  ;;  %405 = vmatpush.msrb.mxu3 %v2520_v44 }
  0x3f   :  { %375 = vmatpush.bf16.msrb.mxu1 %v2423_v26 }
  0x40   :  { %388 = vmatpush.bf16.msrb.mxu2 %v2429_v28  ;;  %406 = vmatpush.msrb.mxu3 %v2526_v46 }
  0x41   :  { %363 = vmatmul.bf16.vlgmr.msrb.gmra.mxu0 %v349_v50  ;;  %v340_v50 = vld [vmem:[%s4270_s3 + $0xf8] sm:$0xff] }
  0x42   :  { %376 = vmatmul.bf16.vlgmr.msrb.gmra.mxu1 %v350_v52  ;;  %407 = vmatpush.msrb.mxu3 %v2535_v49  ;;  %v1909_v52 = vld [vmem:[%s4270_s3 + $0x1c8] sm:$0xff] }
  0x43   :  { %389 = vmatmul.bf16.vlgmr.msrb.gmra.mxu2 %v351_v53  ;;  %448 = vmatpush.msra.mxu0 %v1914_v24  ;;  %v338_v53 = vld [vmem:[%s4270_s3 + $0xe8] sm:$0xff]  ;;  %v332_v24 = vld [vmem:[%s4270_s3 + $0xb8] sm:$0xff] }
  0x44   :  { %408 = vmatpush.msrb.mxu3 %v2541_v51  ;;  %488 = vmatpush.msra.mxu2 %v339_v20  ;;  %v325_v20 = vld [vmem:[%s4270_s3 + $0x80] sm:$0xff] }
  0x45   :  { %468 = vmatpush.msra.mxu1 %v1915_v27  ;;  %449 = vmatpush.msra.mxu0 %v1912_v30  ;;  %v323_v27 = vld [vmem:[%s4270_s3 + $0x70] sm:$0xff]  ;;  %v1901_v30 = vld [vmem:[%s4270_s3 + $0x188] sm:$0xff] }
  0x46   :  { %409 = vmatpush.msrb.mxu3 %v2551_v54  ;;  %489 = vmatpush.msra.mxu2 %v337_v22  ;;  %v1902_v22 = vld [vmem:[%s4270_s3 + $0x190] sm:$0xff] }
  0x47   :  { %469 = vmatpush.msra.mxu1 %v1913_v31  ;;  %450 = vmatpush.msra.mxu0 %v1910_v43  ;;  %v330_v31 = vld [vmem:[%s4270_s3 + $0xa8] sm:$0xff]  ;;  %v1898_v43 = vld [vmem:[%s4270_s3 + $0x170] sm:$0xff] }
  0x48   :  { %410 = vmatpush.msrb.mxu3 %v2556_v55  ;;  %490 = vmatpush.msra.mxu2 %v335_v23  ;;  %v1903_v23 = vld [vmem:[%s4270_s3 + $0x198] sm:$0xff] }
  0x49   :  { %470 = vmatpush.msra.mxu1 %v1911_v45  ;;  %451 = vmatpush.msra.mxu0 %v1908_v48  ;;  %v328_v48 = vld [vmem:[%s4270_s3 + $0x98] sm:$0xff] }
  0x4a   :  { %491 = vmatpush.msra.mxu2 %v333_v42  ;;  %v321_v42 = vld [vmem:[%s4270_s3 + $0x60] sm:$0xff] }
  0x4b   :  { %471 = vmatpush.msra.mxu1 %v1909_v52  ;;  %v319_v52 = vld [vmem:[%s4270_s3 + $0x50] sm:$0xff] }
  0x4c   :  { %492 = vmatpush.msra.mxu2 %v331_v47  ;;  %v1899_v47 = vld [vmem:[%s4270_s3 + $0x178] sm:$0xff] }
  0x9e   :  { %v241_v56 = vpop.f32.mrf.mxu0 }
  0x9f   :  { %v254_v57 = vpop.f32.mrf.mxu1 }
  0xa0   :  { %v255_v58 = vadd.f32 %v254_v57, %v241_v56  ;;  %v329_v56 = vld [vmem:[%s4270_s3 + $0xa0] sm:$0xff]  ;;  %v1906_v57 = vld [vmem:[%s4270_s3 + $0x1b0] sm:$0xff] }
  0xa1   :  { %493 = vmatpush.msra.mxu2 %v329_v56  ;;  %452 = vmatpush.msra.mxu0 %v1906_v57  ;;  %v1897_v56 = vld [vmem:[%s4270_s3 + $0x168] sm:$0xff] }
  0xa2   :  { %v326_v57 = vld [vmem:[%s4270_s3 + $0x88] sm:$0xff] }
  0xa6   :  { %v267_v59 = vpop.f32.mrf.mxu2  ;;  %v243_v61 = vpop.f32.mrf.mxu0 }
  0xa7   :  { %v268_v60 = vadd.f32 %v267_v59, %v255_v58  ;;  %v256_v62 = vpop.f32.mrf.mxu1  ;;  %v1907_v58 = vld [vmem:[%s4270_s3 + $0x1b8] sm:$0xff]  ;;  %v1904_v61 = vld [vmem:[%s4270_s3 + $0x1a0] sm:$0xff] }
  0xa8   :  { %v336_v59 = vld [vmem:[%s4270_s3 + $0xd8] sm:$0xff]  ;;  %v1905_v62 = vld [vmem:[%s4270_s3 + $0x1a8] sm:$0xff]  ;;  %472 = vmatpush.msra.mxu1 %v1907_v58  ;;  %453 = vmatpush.msra.mxu0 %v1904_v61  ;;  %v317_v58 = vld [vmem:[%s4270_s3 + $0x40] sm:$0xff] }
  0xa9   :  { %v271_v63 = vmax.f32 %v268_v60, 0.0  ;;  %v327_v60 = vld [vmem:[%s4270_s3 + $0x90] sm:$0xff]  ;;  %v1895_v61 = vld [vmem:[%s4270_s3 + $0x158] sm:$0xff] }
  0xaa   :  { %494 = vmatpush.msra.mxu2 %v327_v60  ;;  %473 = vmatpush.msra.mxu1 %v1905_v62  ;;  %v324_v62 = vld [vmem:[%s4270_s3 + $0x78] sm:$0xff] }
  0xab   :  { %305 = vmatmul.f32.vlgmr.msra.gmra.mxu3 %v271_v63  ;;  %v334_v63 = vld [vmem:[%s4270_s3 + $0xc8] sm:$0xff]  ;;  %454 = vmatpush.msra.mxu0 %v1902_v22 }
  0xac   :  { %508 = vmatpush.msra.mxu3 %v340_v50  ;;  %495 = vmatpush.msra.mxu2 %v325_v20  ;;  %v1892_v20 = vld [vmem:[%s4270_s3 + $0x140] sm:$0xff]  ;;  %v1893_v22 = vld [vmem:[%s4270_s3 + $0x148] sm:$0xff] }
  0xad   :  { %474 = vmatpush.msra.mxu1 %v1903_v23  ;;  %v322_v23 = vld [vmem:[%s4270_s3 + $0x68] sm:$0xff] }
  0xae   :  { %v269_v29 = vpop.f32.mrf.mxu2  ;;  %509 = vmatpush.msra.mxu3 %v338_v53  ;;  %496 = vmatpush.msra.mxu2 %v323_v27  ;;  %v1896_v53 = vld [vmem:[%s4270_s3 + $0x160] sm:$0xff] }
  0xaf   :  { %v1900_v29 = vld [vmem:[%s4270_s3 + $0x180] sm:$0xff]  ;;  %475 = vmatpush.msra.mxu1 %v1901_v30 }
  0xb0   :  { %510 = vmatpush.msra.mxu3 %v336_v59  ;;  %455 = vmatpush.msra.mxu0 %v1900_v29  ;;  %v1894_v59 = vld [vmem:[%s4270_s3 + $0x150] sm:$0xff]  ;;  %v313_v27 = vld [vmem:[%s4270_s3 + $0x20] sm:$0xff] }
  0xb1   :  { %497 = vmatpush.msra.mxu2 %v321_v42  ;;  %476 = vmatpush.msra.mxu1 %v1899_v47  ;;  %v1890_v29 = vld [vmem:[%s4270_s3 + $0x130] sm:$0xff]  ;;  %v1891_v42 = vld [vmem:[%s4270_s3 + $0x138] sm:$0xff] }
  0xb2   :  { %511 = vmatpush.msra.mxu3 %v334_v63  ;;  %456 = vmatpush.msra.mxu0 %v1898_v43  ;;  %v315_v63 = vld [vmem:[%s4270_s3 + $0x30] sm:$0xff]  ;;  %v320_v43 = vld [vmem:[%s4270_s3 + $0x58] sm:$0xff] }
  0xb3   :  { %498 = vmatpush.msra.mxu2 %v319_v52  ;;  %477 = vmatpush.msra.mxu1 %v1897_v56  ;;  %v311_v47 = vld [vmem:[%s4270_s3 + $0x10] sm:$0xff]  ;;  %v1889_v52 = vld [vmem:[%s4270_s3 + $0x128] sm:$0xff] }
  0xb4   :  { %512 = vmatpush.msra.mxu3 %v332_v24  ;;  %457 = vmatpush.msra.mxu0 %v1896_v53  ;;  %v309_v53 = vld [vmem:[%s4270_s3] sm:$0xff]  ;;  %v318_v56 = vld [vmem:[%s4270_s3 + $0x48] sm:$0xff] }
  0xb5   :  { %499 = vmatpush.msra.mxu2 %v317_v58  ;;  %478 = vmatpush.msra.mxu1 %v1895_v61  ;;  %v1887_v58 = vld [vmem:[%s4270_s3 + $0x118] sm:$0xff] }
  0xb6   :  { %513 = vmatpush.msra.mxu3 %v330_v31  ;;  %458 = vmatpush.msra.mxu0 %v1894_v59  ;;  %v316_v59 = vld [vmem:[%s4270_s3 + $0x38] sm:$0xff] }
  0xb7   :  { %500 = vmatpush.msra.mxu2 %v315_v63  ;;  %479 = vmatpush.msra.mxu1 %v1893_v22  ;;  %v314_v63 = vld [vmem:[%s4270_s3 + $0x28] sm:$0xff] }
  0xb8   :  { %514 = vmatpush.msra.mxu3 %v328_v48  ;;  %459 = vmatpush.msra.mxu0 %v1892_v20  ;;  %v312_v20 = vld [vmem:[%s4270_s3 + $0x18] sm:$0xff]  ;;  %v310_v22 = vld [vmem:[%s4270_s3 + $0x8] sm:$0xff] }
  0xb9   :  { %501 = vmatpush.msra.mxu2 %v313_v27  ;;  %480 = vmatpush.msra.mxu1 %v1891_v42  ;;  %v1917_v27 = vld [vmem:[%s4267_s0 + $0x20] sm:$0xf] }
  0xba   :  { %515 = vmatpush.msra.mxu3 %v326_v57  ;;  %460 = vmatpush.msra.mxu0 %v1890_v29  ;;  %v1886_v57 = vld [vmem:[%s4270_s3 + $0x110] sm:$0xff] }
  0xbb   :  { %502 = vmatpush.msra.mxu2 %v311_v47  ;;  %481 = vmatpush.msra.mxu1 %v1889_v52 }
  0xbc   :  { %516 = vmatpush.msra.mxu3 %v324_v62  ;;  %v1885_v62 = vld [vmem:[%s4270_s3 + $0x108] sm:$0xff] }
  0xbd   :  { %503 = vmatpush.msra.mxu2 %v309_v53  ;;  %482 = vmatpush.msra.mxu1 %v1887_v58 }
  0xbe   :  { %v364_v45 = vpop.f32.mrf.mxu0  ;;  %517 = vmatpush.msra.mxu3 %v322_v23  ;;  %v2807_v23 = vld [vmem:[%s4269_s6] ss:$0 sm:$0xff] }
  0xbf   :  { %v377_v50 = vpop.f32.mrf.mxu1  ;;  %568 = vmatpush.bf16.msrb.mxu2 %v2297_v2  ;;  %483 = vmatpush.msra.mxu1 %v1885_v62  ;;  %v1947_v62 = vld [vmem:[%s4270_s3 + $0x2e8] sm:$0xff] }
  0xc0   :  { %v378_v60 = vadd.f32 %v377_v50, %v364_v45  ;;  %v1888_v50 = vld [vmem:[%s4270_s3 + $0x120] sm:$0xff]  ;;  %518 = vmatpush.msra.mxu3 %v320_v43  ;;  %v1916_v43 = vld [vmem:[%s4267_s0 + $0x18] sm:$0xff] }
  0xc1   :  { %461 = vmatpush.msra.mxu0 %v1888_v50  ;;  %555 = vmatpush.bf16.msrb.mxu1 %v2292_v1  ;;  %v533_v47 = vunpack.c.l.b16 %v1916_v43 }
  0xc2   :  { %519 = vmatpush.msra.mxu3 %v318_v56  ;;  %v1948_v56 = vld [vmem:[%s4270_s3 + $0x2f0] sm:$0xff] }
  0xc3   :  { %462 = vmatpush.msra.mxu0 %v1886_v57  ;;  %569 = vmatpush.bf16.msrb.mxu2 %v2315_v5  ;;  %v536_v50 = vpack.c.b16 %v533_v47, %v533_v47  ;;  %v1946_v57 = vld [vmem:[%s4270_s3 + $0x2e0] sm:$0xff]  ;;  %v1932_v47 = vld [vmem:[%s4270_s3 + $0x270] sm:$0xff] }
  0xc4   :  { %520 = vmatpush.msra.mxu3 %v316_v59  ;;  %v1944_v59 = vld [vmem:[%s4270_s3 + $0x2d0] sm:$0xff] }
  0xc5   :  { %556 = vmatpush.bf16.msrb.mxu1 %v2309_v4 }
  0xc6   :  { %v390_v24 = vpop.f32.mrf.mxu2  ;;  %v366_v31 = vpop.f32.mrf.mxu0  ;;  %521 = vmatpush.msra.mxu3 %v314_v63  ;;  %v1940_v63 = vld [vmem:[%s4270_s3 + $0x2b0] sm:$0xff] }
  0xc7   :  { %v391_v30 = vadd.f32 %v390_v24, %v378_v60  ;;  %v379_v45 = vpop.f32.mrf.mxu1  ;;  %v1884_v60 = vld [vmem:[%s4270_s3 + $0x100] sm:$0xff]  ;;  %570 = vmatpush.bf16.msrb.mxu2 %v2333_v8 }
  0xc8   :  { %463 = vmatpush.msra.mxu0 %v1884_v60  ;;  %522 = vmatpush.msra.mxu3 %v312_v20  ;;  %v1942_v60 = vld [vmem:[%s4270_s3 + $0x2c0] sm:$0xff]  ;;  %v1945_v20 = vld [vmem:[%s4270_s3 + $0x2d8] sm:$0xff] }
  0xc9   :  { %v394_v48 = vmax.f32 %v391_v30, 0.0  ;;  %557 = vmatpush.bf16.msrb.mxu1 %v2327_v7  ;;  %v535_v30 = vunpack.c.l.b16 %v1917_v27 }
  0xca   :  { %542 = vmatpush.bf16.msrb.mxu0 %v2287_v0  ;;  %523 = vmatpush.msra.mxu3 %v310_v22  ;;  %v1938_v22 = vld [vmem:[%s4270_s3 + $0x2a0] sm:$0xff] }
  0xcb   :  { %411 = vmatmul.f32.vlgmr.msrb.gmra.mxu3 %v394_v48  ;;  %571 = vmatpush.bf16.msrb.mxu2 %v2351_v11  ;;  %v538_v31 = vpack.c.b16 %v535_v30, %v535_v30  ;;  %v534_v48 = vunpack.c.h.b16 %v1916_v43  ;;  %v1941_v30 = vld [vmem:[%s4270_s3 + $0x2b8] sm:$0xff]  ;;  %v1950_v43 = vld [vmem:[%s4267_s0 + $0x24] sm:$0xff] }
  0xcc   :  { %582 = vmatpush.msrb.mxu3 %v2438_v32 }
  0xcd   :  { %558 = vmatpush.bf16.msrb.mxu1 %v2345_v10  ;;  %v537_v52 = vpack.c.b16 %v534_v48, %v534_v48  ;;  %v1937_v48 = vld [vmem:[%s4270_s3 + $0x298] sm:$0xff] }
  0xce   :  { %v392_v61 = vpop.f32.mrf.mxu2  ;;  %543 = vmatpush.bf16.msrb.mxu0 %v2304_v3  ;;  %583 = vmatpush.msrb.mxu3 %v2446_v33 }
  0xcf   :  { %572 = vmatpush.bf16.msrb.mxu2 %v2369_v14  ;;  %v1949_v61 = vld [vmem:[%s4270_s3 + $0x2f8] sm:$0xff] }
  0xd0   :  { %584 = vmatpush.msrb.mxu3 %v2454_v34 }
  0xd1   :  { %559 = vmatpush.bf16.msrb.mxu1 %v2363_v13 }
  0xd2   :  { %544 = vmatpush.bf16.msrb.mxu0 %v2322_v6  ;;  %585 = vmatpush.msrb.mxu3 %v2460_v35 }
  0xd3   :  { %573 = vmatpush.bf16.msrb.mxu2 %v2387_v17 }
  0xd4   :  { %586 = vmatpush.msrb.mxu3 %v2469_v36 }
  0xd5   :  { %560 = vmatpush.bf16.msrb.mxu1 %v2381_v16 }
  0xd6   :  { %545 = vmatpush.bf16.msrb.mxu0 %v2340_v9  ;;  %587 = vmatpush.msrb.mxu3 %v2475_v37 }
  0xd7   :  { %574 = vmatpush.bf16.msrb.mxu2 %v2408_v21 }
  0xd8   :  { %588 = vmatpush.msrb.mxu3 %v2484_v38 }
  0xd9   :  { %561 = vmatpush.bf16.msrb.mxu1 %v2399_v19 }
  0xda   :  { %546 = vmatpush.bf16.msrb.mxu0 %v2358_v12  ;;  %589 = vmatpush.msrb.mxu3 %v2490_v39 }
  0xdb   :  { %575 = vmatpush.bf16.msrb.mxu2 %v2429_v28 }
  0xdc   :  { %590 = vmatpush.msrb.mxu3 %v2499_v40 }
  0xdd   :  { %562 = vmatpush.bf16.msrb.mxu1 %v2423_v26 }
  0xde   :  { %547 = vmatpush.bf16.msrb.mxu0 %v2376_v15  ;;  %591 = vmatpush.msrb.mxu3 %v2505_v41 }
  0xe0   :  { %592 = vmatpush.msrb.mxu3 %v2520_v44 }
  0xe2   :  { %548 = vmatpush.bf16.msrb.mxu0 %v2394_v18  ;;  %593 = vmatpush.msrb.mxu3 %v2526_v46 }
  0xe4   :  { %594 = vmatpush.msrb.mxu3 %v2535_v49 }
  0xe6   :  { %549 = vmatpush.bf16.msrb.mxu0 %v2418_v25  ;;  %595 = vmatpush.msrb.mxu3 %v2541_v51 }
  0xe8   :  { %596 = vmatpush.msrb.mxu3 %v2551_v54 }
  0xea   :  { %597 = vmatpush.msrb.mxu3 %v2556_v55 }
 0x12e   :  { %v306_v24 = vpop.f32.mrf.mxu3 }
 0x12f   :  { %v307_v29 = vadd.f32 %v2807_v23, %v306_v24  ;;  %v1943_v24 = vld [vmem:[%s4270_s3 + $0x2c8] sm:$0xff] }
 0x131   :  { %504 = vmatmul.f32.vlgmr.msra.gmra.mxu2 %v307_v29  ;;  %524 = vmatmul.f32.vlgmr.msra.gmra.mxu3 %v307_v29  ;;  %v1936_v29 = vld [vmem:[%s4270_s3 + $0x290] sm:$0xff] }
 0x132   :  { %691 = vmatpush.bf16.msra.mxu2 %v2287_v0  ;;  %704 = vmatpush.bf16.msra.mxu3 %v2292_v1 }
 0x136   :  { %692 = vmatpush.bf16.msra.mxu2 %v2304_v3  ;;  %705 = vmatpush.bf16.msra.mxu3 %v2309_v4 }
 0x139   :  { %576 = vmatmul.bf16.vlgmr.msrb.gmra.mxu2 %v538_v31  ;;  %v1934_v31 = vld [vmem:[%s4270_s3 + $0x280] sm:$0xff] }
 0x13a   :  { %693 = vmatpush.bf16.msra.mxu2 %v2322_v6  ;;  %706 = vmatpush.bf16.msra.mxu3 %v2327_v7 }
 0x13e   :  { %694 = vmatpush.bf16.msra.mxu2 %v2340_v9  ;;  %707 = vmatpush.bf16.msra.mxu3 %v2345_v10 }
 0x142   :  { %695 = vmatpush.bf16.msra.mxu2 %v2358_v12  ;;  %708 = vmatpush.bf16.msra.mxu3 %v2363_v13 }
 0x146   :  { %696 = vmatpush.bf16.msra.mxu2 %v2376_v15  ;;  %709 = vmatpush.bf16.msra.mxu3 %v2381_v16 }
 0x14a   :  { %697 = vmatpush.bf16.msra.mxu2 %v2394_v18  ;;  %710 = vmatpush.bf16.msra.mxu3 %v2399_v19 }
 0x14e   :  { %v412_v42 = vpop.f32.mrf.mxu3  ;;  %698 = vmatpush.bf16.msra.mxu2 %v2418_v25  ;;  %711 = vmatpush.bf16.msra.mxu3 %v2423_v26 }
 0x14f   :  { %v413_v45 = vadd.f32 %v2807_v23, %v412_v42  ;;  %v1939_v42 = vld [vmem:[%s4270_s3 + $0x2a8] sm:$0xff] }
 0x151   :  { %464 = vmatmul.f32.vlgmr.msra.gmra.mxu0 %v413_v45  ;;  %484 = vmatmul.f32.vlgmr.msra.gmra.mxu1 %v413_v45  ;;  %v682_v45 = vunpack.c.l.b16 %v1950_v43 }
 0x152   :  { %635 = vmatpush.msra.mxu0 %v1948_v56  ;;  %655 = vmatpush.msra.mxu1 %v1949_v61  ;;  %v1928_v61 = vld [vmem:[%s4270_s3 + $0x250] sm:$0xff] }
 0x154   :  { %636 = vmatpush.msra.mxu0 %v1946_v57  ;;  %656 = vmatpush.msra.mxu1 %v1947_v62  ;;  %v1930_v57 = vld [vmem:[%s4270_s3 + $0x260] sm:$0xff]  ;;  %v1933_v62 = vld [vmem:[%s4270_s3 + $0x278] sm:$0xff] }
 0x156   :  { %637 = vmatpush.msra.mxu0 %v1944_v59  ;;  %657 = vmatpush.msra.mxu1 %v1945_v20  ;;  %v1935_v59 = vld [vmem:[%s4270_s3 + $0x288] sm:$0xff]  ;;  %v1924_v20 = vld [vmem:[%s4270_s3 + $0x230] sm:$0xff] }
 0x158   :  { %638 = vmatpush.msra.mxu0 %v1942_v60  ;;  %658 = vmatpush.msra.mxu1 %v1943_v24 }
 0x159   :  { %550 = vmatmul.bf16.vlgmr.msrb.gmra.mxu0 %v536_v50  ;;  %563 = vmatmul.bf16.vlgmr.msrb.gmra.mxu1 %v537_v52  ;;  %v685_v50 = vpack.c.b16 %v682_v45, %v682_v45  ;;  %v1925_v45 = vld [vmem:[%s4270_s3 + $0x238] sm:$0xff] }
 0x15a   :  { %639 = vmatpush.msra.mxu0 %v1940_v63  ;;  %659 = vmatpush.msra.mxu1 %v1941_v30  ;;  %v1926_v63 = vld [vmem:[%s4270_s3 + $0x240] sm:$0xff]  ;;  %v1927_v30 = vld [vmem:[%s4270_s3 + $0x248] sm:$0xff] }
 0x15b   :  { %699 = vmatmul.bf16.vlgmr.msra.gmra.mxu2 %v685_v50 }
 0x15c   :  { %640 = vmatpush.msra.mxu0 %v1938_v22  ;;  %660 = vmatpush.msra.mxu1 %v1939_v42  ;;  %v1929_v22 = vld [vmem:[%s4270_s3 + $0x258] sm:$0xff]  ;;  %v1920_v42 = vld [vmem:[%s4270_s3 + $0x210] sm:$0xff] }
 0x15e   :  { %641 = vmatpush.msra.mxu0 %v1936_v29  ;;  %661 = vmatpush.msra.mxu1 %v1937_v48  ;;  %v1922_v29 = vld [vmem:[%s4270_s3 + $0x220] sm:$0xff] }
 0x15f   :  { %v1918_v48 = vld [vmem:[%s4270_s3 + $0x200] sm:$0xff] }
 0x160   :  { %642 = vmatpush.msra.mxu0 %v1934_v31  ;;  %662 = vmatpush.msra.mxu1 %v1935_v59 }
 0x162   :  { %643 = vmatpush.msra.mxu0 %v1932_v47  ;;  %663 = vmatpush.msra.mxu1 %v1933_v62  ;;  %v1960_v62 = vld [vmem:[%s4270_s3 + $0x340] sm:$0xff] }
 0x164   :  { %644 = vmatpush.msra.mxu0 %v1930_v57  ;;  %v683_v57 = vunpack.c.h.b16 %v1950_v43  ;;  %v1967_v43 = vld [vmem:[%s4270_s3 + $0x378] sm:$0xff] }
 0x166   :  { %645 = vmatpush.msra.mxu0 %v1928_v61 }
 0x168   :  { %646 = vmatpush.msra.mxu0 %v1926_v63  ;;  %v1958_v63 = vld [vmem:[%s4270_s3 + $0x330] sm:$0xff] }
 0x16a   :  { %647 = vmatpush.msra.mxu0 %v1924_v20 }
 0x16c   :  { %648 = vmatpush.msra.mxu0 %v1922_v29  ;;  %v1954_v29 = vld [vmem:[%s4270_s3 + $0x310] sm:$0xff] }
 0x16e   :  { %649 = vmatpush.msra.mxu0 %v1920_v42  ;;  %v1952_v42 = vld [vmem:[%s4270_s3 + $0x300] sm:$0xff] }
 0x170   :  { %650 = vmatpush.msra.mxu0 %v1918_v48  ;;  %v3085_v48 = vld [vmem:[%s4266_s1 + $0xb8] sm:$0xff] }
 0x172   :  { %717 = vmatpush.bf16.msrb.mxu0 %v2297_v2  ;;  %v1921_v2 = vld [vmem:[%s4270_s3 + $0x218] sm:$0xff] }
 0x176   :  { %718 = vmatpush.bf16.msrb.mxu0 %v2315_v5  ;;  %v1919_v5 = vld [vmem:[%s4270_s3 + $0x208] sm:$0xff] }
 0x17a   :  { %719 = vmatpush.bf16.msrb.mxu0 %v2333_v8 }
 0x17e   :  { %720 = vmatpush.bf16.msrb.mxu0 %v2351_v11 }
 0x182   :  { %721 = vmatpush.bf16.msrb.mxu0 %v2369_v14 }
 0x186   :  { %722 = vmatpush.bf16.msrb.mxu0 %v2387_v17 }
 0x18a   :  { %723 = vmatpush.bf16.msrb.mxu0 %v2408_v21  ;;  %v1951_v21 = vld [vmem:[%s4267_s0 + $0x2c] sm:$0xf] }
 0x18e   :  { %724 = vmatpush.bf16.msrb.mxu0 %v2429_v28 }
 0x1b4   :  { %v505_v53 = vpop.f32.mrf.mxu2  ;;  %v2959_v11 = vpop.f32.mrf.mxu3 }
 0x1bc   :  { %v577_v58 = vpop.f32.mrf.mxu2 }
 0x1c4   :  { %v579_v27 = vpop.f32.mrf.mxu2 }
 0x1ce   :  { %v465_v52 = vpop.f32.mrf.mxu0  ;;  %v2888_v56 = vpop.f32.mrf.mxu1 }
 0x1cf   :  { %v2896_v60 = vadd.f32 %v505_v53, %v465_v52  ;;  %v1931_v53 = vld [vmem:[%s4270_s3 + $0x268] sm:$0xff] }
 0x1d0   :  { %664 = vmatpush.msra.mxu1 %v1931_v53  ;;  %v1923_v52 = vld [vmem:[%s4270_s3 + $0x228] sm:$0xff]  ;;  %v1963_v53 = vld [vmem:[%s4270_s3 + $0x358] sm:$0xff] }
 0x1d2   :  { %665 = vmatpush.msra.mxu1 %v1929_v22  ;;  %v1956_v22 = vld [vmem:[%s4270_s3 + $0x320] sm:$0xff] }
 0x1d4   :  { %666 = vmatpush.msra.mxu1 %v1927_v30 }
 0x1d6   :  { %v551_v24 = vpop.f32.mrf.mxu0  ;;  %v564_v27 = vpop.f32.mrf.mxu1  ;;  %667 = vmatpush.msra.mxu1 %v1925_v45  ;;  %v1957_v45 = vld [vmem:[%s4270_s3 + $0x328] sm:$0xff] }
 0x1d7   :  { %v565_v31 = vadd.f32 %v564_v27, %v551_v24  ;;  %v1961_v24 = vld [vmem:[%s4270_s3 + $0x348] sm:$0xff] }
 0x1d8   :  { %668 = vmatpush.msra.mxu1 %v1923_v52  ;;  %v3097_v52 = vld [vmem:[%s4266_s1 + $0xa8] sm:$0xff] }
 0x1d9   :  { %v578_v47 = vadd.f32 %v577_v58, %v565_v31  ;;  %v686_v58 = vpack.c.b16 %v683_v57, %v683_v57  ;;  %v1959_v31 = vld [vmem:[%s4270_s3 + $0x338] sm:$0xff]  ;;  %v3103_v57 = vld [vmem:[%s4266_s1 + $0xa0] sm:$0xff] }
 0x1da   :  { %669 = vmatpush.msra.mxu1 %v1921_v2  ;;  %v3127_v2 = vld [vmem:[%s4266_s1 + $0x80] sm:$0xff] }
 0x1db   :  { %v581_v50 = vmax.f32 %v578_v47, 0.0 }
 0x1dc   :  { %670 = vmatpush.msra.mxu1 %v1919_v5  ;;  %v1955_v5 = vld [vmem:[%s4270_s3 + $0x318] sm:$0xff] }
 0x1dd   :  { %598 = vmatmul.f32.vlgmr.msrb.gmra.mxu3 %v581_v50  ;;  %v3091_v50 = vld [vmem:[%s4266_s1 + $0xb0] sm:$0xff] }
 0x1de   :  { %v553_v59 = vpop.f32.mrf.mxu0  ;;  %v566_v61 = vpop.f32.mrf.mxu1  ;;  %731 = vmatpush.msrb.mxu1 %v2438_v32  ;;  %v684_v32 = vunpack.c.l.b16 %v1951_v21 }
 0x1df   :  { %v700_v8 = vpop.f32.mrf.mxu2  ;;  %v3109_v59 = vld [vmem:[%s4266_s1 + $0x98] sm:$0xff]  ;;  %v3115_v61 = vld [vmem:[%s4266_s1 + $0x90] sm:$0xff] }
 0x1e0   :  { %732 = vmatpush.msrb.mxu1 %v2446_v33  ;;  %v687_v33 = vpack.c.b16 %v684_v32, %v684_v32 }
 0x1e2   :  { %733 = vmatpush.msrb.mxu1 %v2454_v34 }
 0x1e4   :  { %734 = vmatpush.msrb.mxu1 %v2460_v35 }
 0x1e5   :  { %712 = vmatmul.bf16.vlgmr.msra.gmra.mxu3 %v686_v58  ;;  %v3121_v58 = vld [vmem:[%s4266_s1 + $0x88] sm:$0xff] }
 0x1e6   :  { %735 = vmatpush.msrb.mxu1 %v2469_v36 }
 0x1e7   :  { %v702_v14 = vpop.f32.mrf.mxu2 }
 0x1e8   :  { %736 = vmatpush.msrb.mxu1 %v2475_v37  ;;  %v1984_v14 = vld [vmem:[%s4267_s0 + $0x30] sm:$0xff] }
 0x1e9   :  { %v832_v21 = vunpack.c.h.b16 %v1984_v14 }
 0x1ea   :  { %737 = vmatpush.msrb.mxu1 %v2484_v38  ;;  %v1964_v38 = vld [vmem:[%s4270_s3 + $0x360] sm:$0xff] }
 0x1ec   :  { %738 = vmatpush.msrb.mxu1 %v2490_v39  ;;  %v1969_v39 = vld [vmem:[%s4270_s3 + $0x388] sm:$0xff] }
 0x1ee   :  { %739 = vmatpush.msrb.mxu1 %v2499_v40 }
 0x1f0   :  { %740 = vmatpush.msrb.mxu1 %v2505_v41  ;;  %v1962_v41 = vld [vmem:[%s4270_s3 + $0x350] sm:$0xff] }
 0x1f2   :  { %741 = vmatpush.msrb.mxu1 %v2520_v44 }
 0x1f4   :  { %742 = vmatpush.msrb.mxu1 %v2526_v46 }
 0x1f6   :  { %743 = vmatpush.msrb.mxu1 %v2535_v49 }
 0x1f8   :  { %744 = vmatpush.msrb.mxu1 %v2541_v51 }
 0x1fa   :  { %745 = vmatpush.msrb.mxu1 %v2551_v54 }
 0x1fc   :  { %746 = vmatpush.msrb.mxu1 %v2556_v55 }
 0x260   :  { %v599_v17 = vpop.f32.mrf.mxu3 }
 0x261   :  { %v600_v28 = vadd.f32 %v2807_v23, %v599_v17  ;;  %v831_v17 = vunpack.c.l.b16 %v1984_v14  ;;  %v2009_v14 = vld [vmem:[%s4270_s3 + $0x4b8] sm:$0xff] }
 0x263   :  { %651 = vmatmul.f32.vlgmr.msra.gmra.mxu0 %v600_v28  ;;  %671 = vmatmul.f32.vlgmr.msra.gmra.mxu1 %v600_v28  ;;  %v3142_v28 = vld [vmem:[%s4268_s2 + $0x78] sm:$0xff]  ;;  %v834_v32 = vpack.c.b16 %v831_v17, %v831_v17  ;;  %v2002_v17 = vld [vmem:[%s4270_s3 + $0x480] sm:$0xff] }
 0x264   :  { %840 = vmatpush.bf16.msra.mxu0 %v2287_v0  ;;  %853 = vmatpush.bf16.msra.mxu1 %v2292_v1  ;;  %v1982_v0 = vld [vmem:[%s4270_s3 + $0x3f0] sm:$0xff]  ;;  %v1980_v1 = vld [vmem:[%s4270_s3 + $0x3e0] sm:$0xff] }
 0x265   :  { %784 = vmatpush.msrb.mxu2 %v1982_v0  ;;  %v3166_v0 = vld [vmem:[%s4268_s2 + $0x58] sm:$0xff] }
 0x267   :  { %785 = vmatpush.msrb.mxu2 %v1980_v1  ;;  %v3172_v1 = vld [vmem:[%s4268_s2 + $0x50] sm:$0xff] }
 0x268   :  { %v713_v34 = vpop.f32.mrf.mxu3  ;;  %841 = vmatpush.bf16.msra.mxu0 %v2304_v3  ;;  %854 = vmatpush.bf16.msra.mxu1 %v2309_v4  ;;  %v1978_v3 = vld [vmem:[%s4270_s3 + $0x3d0] sm:$0xff]  ;;  %v1976_v4 = vld [vmem:[%s4270_s3 + $0x3c0] sm:$0xff] }
 0x269   :  { %v2974_v35 = vadd.f32 %v713_v34, %v700_v8  ;;  %786 = vmatpush.msrb.mxu2 %v1978_v3  ;;  %v1953_v8 = vld [vmem:[%s4270_s3 + $0x308] sm:$0xff]  ;;  %v3148_v34 = vld [vmem:[%s4268_s2 + $0x70] sm:$0xff] }
 0x26a   :  { %v3178_v3 = vld [vmem:[%s4268_s2 + $0x48] sm:$0xff] }
 0x26b   :  { %725 = vmatmul.bf16.vlgmr.msrb.gmra.mxu0 %v687_v33  ;;  %787 = vmatpush.msrb.mxu2 %v1976_v4  ;;  %v835_v33 = vpack.c.b16 %v832_v21, %v832_v21  ;;  %v3184_v4 = vld [vmem:[%s4268_s2 + $0x40] sm:$0xff]  ;;  %v2007_v21 = vld [vmem:[%s4270_s3 + $0x4a8] sm:$0xff] }
 0x26c   :  { %842 = vmatpush.bf16.msra.mxu0 %v2322_v6  ;;  %855 = vmatpush.bf16.msra.mxu1 %v2327_v7  ;;  %v1983_v6 = vld [vmem:[%s4270_s3 + $0x3f8] sm:$0xff]  ;;  %v1981_v7 = vld [vmem:[%s4270_s3 + $0x3e8] sm:$0xff] }
 0x26d   :  { %804 = vmatpush.msrb.mxu3 %v1983_v6  ;;  %v3190_v6 = vld [vmem:[%s4268_s2 + $0x38] sm:$0xff] }
 0x26f   :  { %805 = vmatpush.msrb.mxu3 %v1981_v7  ;;  %v3196_v7 = vld [vmem:[%s4268_s2 + $0x30] sm:$0xff] }
 0x270   :  { %v715_v36 = vpop.f32.mrf.mxu3  ;;  %843 = vmatpush.bf16.msra.mxu0 %v2340_v9  ;;  %856 = vmatpush.bf16.msra.mxu1 %v2345_v10  ;;  %v1974_v9 = vld [vmem:[%s4270_s3 + $0x3b0] sm:$0xff]  ;;  %v1979_v10 = vld [vmem:[%s4270_s3 + $0x3d8] sm:$0xff] }
 0x271   :  { %788 = vmatpush.msrb.mxu2 %v1974_v9  ;;  %806 = vmatpush.msrb.mxu3 %v1979_v10  ;;  %v3160_v36 = vld [vmem:[%s4268_s2 + $0x60] sm:$0xff] }
 0x274   :  { %844 = vmatpush.bf16.msra.mxu0 %v2358_v12  ;;  %857 = vmatpush.bf16.msra.mxu1 %v2363_v13  ;;  %v1972_v12 = vld [vmem:[%s4270_s3 + $0x3a0] sm:$0xff]  ;;  %v1977_v13 = vld [vmem:[%s4270_s3 + $0x3c8] sm:$0xff] }
 0x275   :  { %789 = vmatpush.msrb.mxu2 %v1972_v12  ;;  %807 = vmatpush.msrb.mxu3 %v1977_v13  ;;  %v1985_v12 = vld [vmem:[%s4267_s0 + $0x38] sm:$0xf] }
 0x278   :  { %845 = vmatpush.bf16.msra.mxu0 %v2376_v15  ;;  %858 = vmatpush.bf16.msra.mxu1 %v2381_v16  ;;  %v1970_v15 = vld [vmem:[%s4270_s3 + $0x390] sm:$0xff]  ;;  %v1975_v16 = vld [vmem:[%s4270_s3 + $0x3b8] sm:$0xff] }
 0x279   :  { %790 = vmatpush.msrb.mxu2 %v1970_v15  ;;  %808 = vmatpush.msrb.mxu3 %v1975_v16  ;;  %v3238_v15 = vld [vmem:[%s4266_s1 + $0x28] sm:$0xff] }
 0x27a   :  { %v3244_v16 = vld [vmem:[%s4266_s1 + $0x68] sm:$0xff] }
 0x27c   :  { %846 = vmatpush.bf16.msra.mxu0 %v2394_v18  ;;  %859 = vmatpush.bf16.msra.mxu1 %v2399_v19  ;;  %v1968_v18 = vld [vmem:[%s4270_s3 + $0x380] sm:$0xff]  ;;  %v1973_v19 = vld [vmem:[%s4270_s3 + $0x3a8] sm:$0xff] }
 0x27d   :  { %791 = vmatpush.msrb.mxu2 %v1968_v18  ;;  %809 = vmatpush.msrb.mxu3 %v1973_v19  ;;  %v3250_v18 = vld [vmem:[%s4266_s1 + $0x20] sm:$0xff] }
 0x27e   :  { %v3256_v19 = vld [vmem:[%s4266_s1 + $0x60] sm:$0xff] }
 0x280   :  { %847 = vmatpush.bf16.msra.mxu0 %v2418_v25  ;;  %860 = vmatpush.bf16.msra.mxu1 %v2423_v26  ;;  %v1966_v25 = vld [vmem:[%s4270_s3 + $0x370] sm:$0xff]  ;;  %v1971_v26 = vld [vmem:[%s4270_s3 + $0x398] sm:$0xff] }
 0x281   :  { %792 = vmatpush.msrb.mxu2 %v1966_v25  ;;  %810 = vmatpush.msrb.mxu3 %v1971_v26  ;;  %v3262_v25 = vld [vmem:[%s4266_s1 + $0x18] sm:$0xff] }
 0x282   :  { %v3268_v26 = vld [vmem:[%s4266_s1 + $0x58] sm:$0xff] }
 0x283   :  { %793 = vmatpush.msrb.mxu2 %v1964_v38  ;;  %811 = vmatpush.msrb.mxu3 %v1969_v39  ;;  %v3280_v38 = vld [vmem:[%s4266_s1 + $0x50] sm:$0xff]  ;;  %v3286_v39 = vld [vmem:[%s4266_s1 + $0x8] sm:$0xff] }
 0x284   :  { %848 = vmatmul.bf16.vlgmr.msra.gmra.mxu0 %v834_v32  ;;  %v2018_v32 = vld [vmem:[%s4267_s0 + $0x3c] sm:$0xff] }
 0x285   :  { %794 = vmatpush.msrb.mxu2 %v1962_v41  ;;  %812 = vmatpush.msrb.mxu3 %v1967_v43  ;;  %v3292_v41 = vld [vmem:[%s4266_s1 + $0x48] sm:$0xff]  ;;  %v3298_v43 = vld [vmem:[%s4266_s1] sm:$0xff] }
 0x287   :  { %795 = vmatpush.msrb.mxu2 %v1960_v62  ;;  %v3304_v62 = vld [vmem:[%s4266_s1 + $0x40] sm:$0xff] }
 0x289   :  { %796 = vmatpush.msrb.mxu2 %v1958_v63 }
 0x28b   :  { %797 = vmatpush.msrb.mxu2 %v1956_v22  ;;  %v2016_v22 = vld [vmem:[%s4270_s3 + $0x4f0] sm:$0xff] }
 0x28c   :  { %933 = vmatpush.msrb.mxu0 %v2016_v22  ;;  %v1996_v22 = vld [vmem:[%s4270_s3 + $0x450] sm:$0xff] }
 0x28d   :  { %798 = vmatpush.msrb.mxu2 %v1954_v29  ;;  %v2010_v29 = vld [vmem:[%s4270_s3 + $0x4c0] sm:$0xff] }
 0x28f   :  { %799 = vmatpush.msrb.mxu2 %v1952_v42  ;;  %v2008_v42 = vld [vmem:[%s4270_s3 + $0x4b0] sm:$0xff] }
 0x291   :  { %866 = vmatpush.bf16.msra.mxu2 %v3085_v48 }
 0x295   :  { %867 = vmatpush.bf16.msra.mxu2 %v3091_v50 }
 0x299   :  { %868 = vmatpush.bf16.msra.mxu2 %v3097_v52 }
 0x29d   :  { %869 = vmatpush.bf16.msra.mxu2 %v3103_v57 }
 0x2a1   :  { %870 = vmatpush.bf16.msra.mxu2 %v3109_v59 }
 0x2a5   :  { %871 = vmatpush.bf16.msra.mxu2 %v3115_v61 }
 0x2a9   :  { %872 = vmatpush.bf16.msra.mxu2 %v3121_v58 }
 0x2ad   :  { %873 = vmatpush.bf16.msra.mxu2 %v3127_v2 }
 0x2e0   :  { %v652_v37 = vpop.f32.mrf.mxu0  ;;  %v3199_v9 = vpop.f32.mrf.mxu1 }
 0x2e1   :  { %v3043_v40 = vadd.f32 %v652_v37, %v2896_v60  ;;  %v1965_v60 = vld [vmem:[%s4270_s3 + $0x368] sm:$0xff]  ;;  %v3274_v37 = vld [vmem:[%s4266_s1 + $0x10] sm:$0xff] }
 0x2e2   :  { %813 = vmatpush.msrb.mxu3 %v1965_v60 }
 0x2e4   :  { %814 = vmatpush.msrb.mxu3 %v1963_v53 }
 0x2e6   :  { %815 = vmatpush.msrb.mxu3 %v1961_v24  ;;  %v2014_v24 = vld [vmem:[%s4270_s3 + $0x4e0] sm:$0xff] }
 0x2e7   :  { %934 = vmatpush.msrb.mxu0 %v2014_v24  ;;  %v2001_v24 = vld [vmem:[%s4270_s3 + $0x478] sm:$0xff] }
 0x2e8   :  { %v726_v20 = vpop.f32.mrf.mxu0  ;;  %816 = vmatpush.msrb.mxu3 %v1959_v31  ;;  %v2015_v31 = vld [vmem:[%s4270_s3 + $0x4e8] sm:$0xff] }
 0x2e9   :  { %v727_v27 = vadd.f32 %v726_v20, %v2974_v35  ;;  %v3154_v35 = vld [vmem:[%s4268_s2 + $0x68] sm:$0xff] }
 0x2ea   :  { %817 = vmatpush.msrb.mxu3 %v1957_v45  ;;  %v2013_v45 = vld [vmem:[%s4270_s3 + $0x4d8] sm:$0xff] }
 0x2eb   :  { %v730_v30 = vmax.f32 %v727_v27, 0.0  ;;  %v2012_v27 = vld [vmem:[%s4270_s3 + $0x4d0] sm:$0xff] }
 0x2ec   :  { %818 = vmatpush.msrb.mxu3 %v1955_v5  ;;  %935 = vmatpush.msrb.mxu0 %v2012_v27  ;;  %v2011_v5 = vld [vmem:[%s4270_s3 + $0x4c8] sm:$0xff]  ;;  %v1994_v27 = vld [vmem:[%s4270_s3 + $0x440] sm:$0xff] }
 0x2ed   :  { %747 = vmatmul.f32.vlgmr.msrb.gmra.mxu1 %v730_v30  ;;  %v2017_v30 = vld [vmem:[%s4270_s3 + $0x4f8] sm:$0xff] }
 0x2ee   :  { %819 = vmatpush.msrb.mxu3 %v1953_v8  ;;  %953 = vmatpush.msrb.mxu1 %v2017_v30  ;;  %v2004_v8 = vld [vmem:[%s4270_s3 + $0x490] sm:$0xff] }
 0x2ef   :  { %936 = vmatpush.msrb.mxu0 %v2010_v29  ;;  %v1992_v30 = vld [vmem:[%s4270_s3 + $0x430] sm:$0xff] }
 0x2f0   :  { %v728_v47 = vpop.f32.mrf.mxu0  ;;  %880 = vmatpush.msra.mxu3 %v3142_v28  ;;  %954 = vmatpush.msrb.mxu1 %v2015_v31  ;;  %v1997_v31 = vld [vmem:[%s4270_s3 + $0x458] sm:$0xff] }
 0x2f1   :  { %v2006_v47 = vld [vmem:[%s4270_s3 + $0x4a0] sm:$0xff]  ;;  %937 = vmatpush.msrb.mxu0 %v2008_v42 }
 0x2f2   :  { %881 = vmatpush.msra.mxu3 %v3148_v34  ;;  %955 = vmatpush.msrb.mxu1 %v2013_v45  ;;  %v1990_v45 = vld [vmem:[%s4270_s3 + $0x420] sm:$0xff] }
 0x2f3   :  { %938 = vmatpush.msrb.mxu0 %v2006_v47  ;;  %v1988_v47 = vld [vmem:[%s4270_s3 + $0x410] sm:$0xff] }
 0x2f4   :  { %882 = vmatpush.msra.mxu3 %v3154_v35  ;;  %956 = vmatpush.msrb.mxu1 %v2011_v5 }
 0x2f5   :  { %861 = vmatmul.bf16.vlgmr.msra.gmra.mxu1 %v835_v33  ;;  %939 = vmatpush.msrb.mxu0 %v2004_v8  ;;  %v980_v33 = vunpack.c.l.b16 %v2018_v32  ;;  %v1993_v8 = vld [vmem:[%s4270_s3 + $0x438] sm:$0xff] }
 0x2f6   :  { %883 = vmatpush.msra.mxu3 %v3160_v36  ;;  %957 = vmatpush.msrb.mxu1 %v2009_v14  ;;  %v1986_v14 = vld [vmem:[%s4270_s3 + $0x400] sm:$0xff] }
 0x2f7   :  { %940 = vmatpush.msrb.mxu0 %v2002_v17  ;;  %v981_v17 = vunpack.c.h.b16 %v2018_v32  ;;  %v1989_v32 = vld [vmem:[%s4270_s3 + $0x418] sm:$0xff] }
 0x2f8   :  { %884 = vmatpush.msra.mxu3 %v3166_v0  ;;  %958 = vmatpush.msrb.mxu1 %v2007_v21  ;;  %v1991_v21 = vld [vmem:[%s4270_s3 + $0x428] sm:$0xff] }
 0x2fa   :  { %885 = vmatpush.msra.mxu3 %v3172_v1 }
 0x2fc   :  { %886 = vmatpush.msra.mxu3 %v3178_v3 }
 0x2fe   :  { %887 = vmatpush.msra.mxu3 %v3184_v4 }
 0x300   :  { %888 = vmatpush.msra.mxu3 %v3190_v6 }
 0x301   :  { %v849_v60 = vpop.f32.mrf.mxu0 }
 0x302   :  { %889 = vmatpush.msra.mxu3 %v3196_v7 }
 0x304   :  { %890 = vmatpush.msra.mxu3 %v2520_v44  ;;  %v833_v44 = vunpack.c.l.b16 %v1985_v12  ;;  %v2005_v12 = vld [vmem:[%s4270_s3 + $0x498] sm:$0xff] }
 0x305   :  { %959 = vmatpush.msrb.mxu1 %v2005_v12  ;;  %v1987_v12 = vld [vmem:[%s4270_s3 + $0x408] sm:$0xff] }
 0x306   :  { %891 = vmatpush.msra.mxu3 %v2526_v46  ;;  %v3214_v46 = vld [vmem:[%s4266_s1 + $0x38] sm:$0xff] }
 0x308   :  { %892 = vmatpush.msra.mxu3 %v2535_v49  ;;  %v3220_v49 = vld [vmem:[%s4266_s1 + $0x78] sm:$0xff] }
 0x309   :  { %v851_v53 = vpop.f32.mrf.mxu0 }
 0x30a   :  { %893 = vmatpush.msra.mxu3 %v2541_v51  ;;  %v836_v51 = vpack.c.b16 %v833_v44, %v833_v44  ;;  %v2003_v53 = vld [vmem:[%s4270_s3 + $0x488] sm:$0xff] }
 0x30b   :  { %960 = vmatpush.msrb.mxu1 %v2003_v53  ;;  %v3438_v53 = vld [vmem:[%s4268_s2 + $0x20] sm:$0xff] }
 0x30c   :  { %894 = vmatpush.msra.mxu3 %v2551_v54  ;;  %v3226_v54 = vld [vmem:[%s4266_s1 + $0x30] sm:$0xff] }
 0x30d   :  { %961 = vmatpush.msrb.mxu1 %v2001_v24 }
 0x30e   :  { %895 = vmatpush.msra.mxu3 %v2556_v55  ;;  %v3232_v55 = vld [vmem:[%s4266_s1 + $0x70] sm:$0xff] }
 0x36a   :  { %v748_v10 = vpop.f32.mrf.mxu1 }
 0x36b   :  { %v749_v13 = vadd.f32 %v2807_v23, %v748_v10  ;;  %v2000_v10 = vld [vmem:[%s4270_s3 + $0x470] sm:$0xff] }
 0x36c   :  { %941 = vmatpush.msrb.mxu0 %v2000_v10  ;;  %v984_v10 = vpack.c.b16 %v981_v17, %v981_v17  ;;  %v2044_v17 = vld [vmem:[%s4270_s3 + $0x5c0] sm:$0xff] }
 0x36d   :  { %800 = vmatmul.f32.vlgmr.msrb.gmra.mxu2 %v749_v13  ;;  %820 = vmatmul.f32.vlgmr.msrb.gmra.mxu3 %v749_v13  ;;  %v983_v13 = vpack.c.b16 %v980_v33, %v980_v33 }
 0x36e   :  { %989 = vmatpush.bf16.msrb.mxu2 %v3214_v46  ;;  %1002 = vmatpush.bf16.msrb.mxu3 %v3220_v49 }
 0x372   :  { %990 = vmatpush.bf16.msrb.mxu2 %v3226_v54  ;;  %1003 = vmatpush.bf16.msrb.mxu3 %v3232_v55  ;;  %v862_v63 = vpop.f32.mrf.mxu1 }
 0x373   :  { %v863_v29 = vadd.f32 %v862_v63, %v849_v60  ;;  %v1995_v60 = vld [vmem:[%s4270_s3 + $0x448] sm:$0xff] }
 0x375   :  { %874 = vmatmul.bf16.vlgmr.msra.gmra.mxu2 %v836_v51  ;;  %v1998_v51 = vld [vmem:[%s4270_s3 + $0x460] sm:$0xff] }
 0x376   :  { %991 = vmatpush.bf16.msrb.mxu2 %v3238_v15  ;;  %1004 = vmatpush.bf16.msrb.mxu3 %v3244_v16 }
 0x377   :  { %942 = vmatpush.msrb.mxu0 %v1998_v51 }
 0x379   :  { %943 = vmatpush.msrb.mxu0 %v1996_v22  ;;  %v3444_v22 = vld [vmem:[%s4268_s2 + $0x18] sm:$0xff] }
 0x37a   :  { %992 = vmatpush.bf16.msrb.mxu2 %v3250_v18  ;;  %1005 = vmatpush.bf16.msrb.mxu3 %v3256_v19  ;;  %v864_v20 = vpop.f32.mrf.mxu1 }
 0x37b   :  { %944 = vmatpush.msrb.mxu0 %v1994_v27  ;;  %v3450_v27 = vld [vmem:[%s4268_s2 + $0x10] sm:$0xff] }
 0x37d   :  { %945 = vmatpush.msrb.mxu0 %v1992_v30  ;;  %v2019_v30 = vld [vmem:[%s4267_s0 + $0x44] sm:$0xf] }
 0x37e   :  { %993 = vmatpush.bf16.msrb.mxu2 %v3262_v25  ;;  %1006 = vmatpush.bf16.msrb.mxu3 %v3268_v26 }
 0x37f   :  { %946 = vmatpush.msrb.mxu0 %v1990_v45  ;;  %v982_v45 = vunpack.c.l.b16 %v2019_v30  ;;  %v2036_v30 = vld [vmem:[%s4270_s3 + $0x580] sm:$0xff] }
 0x381   :  { %947 = vmatpush.msrb.mxu0 %v1988_v47 }
 0x382   :  { %994 = vmatpush.bf16.msrb.mxu2 %v3274_v37  ;;  %1007 = vmatpush.bf16.msrb.mxu3 %v3280_v38 }
 0x383   :  { %948 = vmatpush.msrb.mxu0 %v1986_v14  ;;  %v2046_v14 = vld [vmem:[%s4270_s3 + $0x5d0] sm:$0xff] }
 0x385   :  { %1015 = vmatpush.bf16.msra.mxu0 %v3085_v48 }
 0x386   :  { %995 = vmatpush.bf16.msrb.mxu2 %v3286_v39  ;;  %1008 = vmatpush.bf16.msrb.mxu3 %v3292_v41 }
 0x389   :  { %1016 = vmatpush.bf16.msra.mxu0 %v3091_v50 }
 0x38a   :  { %996 = vmatpush.bf16.msrb.mxu2 %v3298_v43  ;;  %1009 = vmatpush.bf16.msrb.mxu3 %v3304_v62 }
 0x38d   :  { %997 = vmatmul.bf16.vlgmr.msrb.gmra.mxu2 %v983_v13  ;;  %1017 = vmatpush.bf16.msra.mxu0 %v3097_v52 }
 0x391   :  { %1018 = vmatpush.bf16.msra.mxu0 %v3103_v57 }
 0x395   :  { %1019 = vmatpush.bf16.msra.mxu0 %v3109_v59 }
 0x399   :  { %1020 = vmatpush.bf16.msra.mxu0 %v3115_v61 }
 0x39d   :  { %1021 = vmatpush.bf16.msra.mxu0 %v3121_v58 }
 0x3a1   :  { %1022 = vmatpush.bf16.msra.mxu0 %v3127_v2 }
 0x3f0   :  { %v801_v44 = vpop.f32.mrf.mxu2  ;;  %v3433_v51 = vpop.f32.mrf.mxu3 }
 0x3f1   :  { %v3365_v20 = vadd.f32 %v801_v44, %v3043_v40  ;;  %v1999_v40 = vld [vmem:[%s4270_s3 + $0x468] sm:$0xff] }
 0x3f2   :  { %962 = vmatpush.msrb.mxu1 %v1999_v40  ;;  %v3430_v44 = vld [vmem:[%s4268_s2 + $0x28] sm:$0xff] }
 0x3f3   :  { %v3456_v40 = vld [vmem:[%s4268_s2 + $0x8] sm:$0xff] }
 0x3f4   :  { %963 = vmatpush.msrb.mxu1 %v1997_v31 }
 0x3f6   :  { %964 = vmatpush.msrb.mxu1 %v1995_v60  ;;  %v985_v60 = vpack.c.b16 %v982_v45, %v982_v45  ;;  %v2034_v45 = vld [vmem:[%s4270_s3 + $0x570] sm:$0xff] }
 0x3f8   :  { %v875_v42 = vpop.f32.mrf.mxu2  ;;  %965 = vmatpush.msrb.mxu1 %v1993_v8  ;;  %v2048_v8 = vld [vmem:[%s4270_s3 + $0x5e0] sm:$0xff] }
 0x3f9   :  { %v876_v63 = vadd.f32 %v875_v42, %v863_v29  ;;  %v3466_v42 = vld [vmem:[%s4268_s2] sm:$0xff] }
 0x3fa   :  { %966 = vmatpush.msrb.mxu1 %v1991_v21  ;;  %v2051_v21 = vld [vmem:[%s4270_s3 + $0x5f8] sm:$0xff] }
 0x3fb   :  { %v879_v5 = vmax.f32 %v876_v63, 0.0 }
 0x3fc   :  { %967 = vmatpush.msrb.mxu1 %v1989_v32  ;;  %v2047_v32 = vld [vmem:[%s4270_s3 + $0x5d8] sm:$0xff] }
 0x3fd   :  { %896 = vmatmul.f32.vlgmr.msra.gmra.mxu3 %v879_v5  ;;  %v2050_v5 = vld [vmem:[%s4270_s3 + $0x5f0] sm:$0xff] }
 0x3fe   :  { %968 = vmatpush.msrb.mxu1 %v1987_v12  ;;  %1082 = vmatpush.msra.mxu2 %v2050_v5  ;;  %v2040_v12 = vld [vmem:[%s4270_s3 + $0x5a0] sm:$0xff]  ;;  %v2037_v5 = vld [vmem:[%s4270_s3 + $0x588] sm:$0xff] }
 0x3ff   :  { %1102 = vmatpush.msra.mxu3 %v2051_v21  ;;  %v2028_v21 = vld [vmem:[%s4270_s3 + $0x540] sm:$0xff] }
 0x400   :  { %v877_v33 = vpop.f32.mrf.mxu2  ;;  %1029 = vmatpush.msra.mxu1 %v3142_v28  ;;  %1083 = vmatpush.msra.mxu2 %v2048_v8 }
 0x401   :  { %v2049_v33 = vld [vmem:[%s4270_s3 + $0x5e8] sm:$0xff] }
 0x402   :  { %1030 = vmatpush.msra.mxu1 %v3148_v34  ;;  %1084 = vmatpush.msra.mxu2 %v2046_v14  ;;  %v2030_v14 = vld [vmem:[%s4270_s3 + $0x550] sm:$0xff] }
 0x403   :  { %1103 = vmatpush.msra.mxu3 %v2049_v33  ;;  %v2026_v33 = vld [vmem:[%s4270_s3 + $0x530] sm:$0xff] }
 0x404   :  { %1031 = vmatpush.msra.mxu1 %v3154_v35  ;;  %1085 = vmatpush.msra.mxu2 %v2044_v17  ;;  %v2035_v17 = vld [vmem:[%s4270_s3 + $0x578] sm:$0xff] }
 0x405   :  { %1010 = vmatmul.bf16.vlgmr.msrb.gmra.mxu3 %v984_v10  ;;  %v2042_v10 = vld [vmem:[%s4270_s3 + $0x5b0] sm:$0xff] }
 0x406   :  { %1032 = vmatpush.msra.mxu1 %v3160_v36  ;;  %1086 = vmatpush.msra.mxu2 %v2042_v10  ;;  %v2031_v10 = vld [vmem:[%s4270_s3 + $0x558] sm:$0xff] }
 0x407   :  { %1104 = vmatpush.msra.mxu3 %v2047_v32 }
 0x408   :  { %1033 = vmatpush.msra.mxu1 %v3166_v0  ;;  %1087 = vmatpush.msra.mxu2 %v2040_v12  ;;  %v2024_v12 = vld [vmem:[%s4270_s3 + $0x520] sm:$0xff] }
 0x40a   :  { %1034 = vmatpush.msra.mxu1 %v3172_v1 }
 0x40c   :  { %1035 = vmatpush.msra.mxu1 %v3178_v3 }
 0x40e   :  { %1036 = vmatpush.msra.mxu1 %v3184_v4 }
 0x410   :  { %1037 = vmatpush.msra.mxu1 %v3190_v6  ;;  %v998_v13 = vpop.f32.mrf.mxu2 }
 0x412   :  { %1038 = vmatpush.msra.mxu1 %v3196_v7 }
 0x414   :  { %1039 = vmatpush.msra.mxu1 %v3430_v44 }
 0x416   :  { %1040 = vmatpush.msra.mxu1 %v3438_v53 }
 0x418   :  { %1041 = vmatpush.msra.mxu1 %v3444_v22  ;;  %v1000_v24 = vpop.f32.mrf.mxu2 }
 0x419   :  { %v2038_v24 = vld [vmem:[%s4270_s3 + $0x590] sm:$0xff] }
 0x41a   :  { %1042 = vmatpush.msra.mxu1 %v3450_v27  ;;  %1088 = vmatpush.msra.mxu2 %v2038_v24 }
 0x41c   :  { %1043 = vmatpush.msra.mxu1 %v3456_v40  ;;  %1089 = vmatpush.msra.mxu2 %v2036_v30 }
 0x41e   :  { %1044 = vmatpush.msra.mxu1 %v3466_v42  ;;  %1090 = vmatpush.msra.mxu2 %v2034_v45  ;;  %v2020_v45 = vld [vmem:[%s4270_s3 + $0x500] sm:$0xff] }
 0x480   :  { %v897_v29 = vpop.f32.mrf.mxu3 }
 0x481   :  { %v898_v31 = vadd.f32 %v2807_v23, %v897_v29  ;;  %v2043_v29 = vld [vmem:[%s4270_s3 + $0x5b8] sm:$0xff] }
 0x483   :  { %949 = vmatmul.f32.vlgmr.msrb.gmra.mxu0 %v898_v31  ;;  %969 = vmatmul.f32.vlgmr.msrb.gmra.mxu1 %v898_v31  ;;  %v2041_v31 = vld [vmem:[%s4270_s3 + $0x5a8] sm:$0xff] }
 0x484   :  { %1138 = vmatpush.bf16.msrb.mxu0 %v3214_v46  ;;  %1151 = vmatpush.bf16.msrb.mxu1 %v3220_v49 }
 0x488   :  { %v1011_v63 = vpop.f32.mrf.mxu3  ;;  %1139 = vmatpush.bf16.msrb.mxu0 %v3226_v54  ;;  %1152 = vmatpush.bf16.msrb.mxu1 %v3232_v55 }
 0x489   :  { %v3473_v23 = vadd.f32 %v1011_v63, %v998_v13  ;;  %v2045_v13 = vld [vmem:[%s4270_s3 + $0x5c8] sm:$0xff] }
 0x48a   :  { %1105 = vmatpush.msra.mxu3 %v2045_v13  ;;  %v2029_v13 = vld [vmem:[%s4270_s3 + $0x548] sm:$0xff] }
 0x48b   :  { %1023 = vmatmul.bf16.vlgmr.msra.gmra.mxu0 %v985_v60  ;;  %v2039_v60 = vld [vmem:[%s4270_s3 + $0x598] sm:$0xff] }
 0x48c   :  { %1140 = vmatpush.bf16.msrb.mxu0 %v3238_v15  ;;  %1153 = vmatpush.bf16.msrb.mxu1 %v3244_v16 }
 0x48d   :  { %1106 = vmatpush.msra.mxu3 %v2043_v29  ;;  %v2022_v29 = vld [vmem:[%s4270_s3 + $0x510] sm:$0xff] }
 0x48f   :  { %1107 = vmatpush.msra.mxu3 %v2041_v31  ;;  %v2027_v31 = vld [vmem:[%s4270_s3 + $0x538] sm:$0xff] }
 0x490   :  { %v1013_v47 = vpop.f32.mrf.mxu3  ;;  %1141 = vmatpush.bf16.msrb.mxu0 %v3250_v18  ;;  %1154 = vmatpush.bf16.msrb.mxu1 %v3256_v19 }
 0x491   :  { %v2032_v47 = vld [vmem:[%s4270_s3 + $0x560] sm:$0xff]  ;;  %1108 = vmatpush.msra.mxu3 %v2039_v60 }
 0x492   :  { %1091 = vmatpush.msra.mxu2 %v2032_v47  ;;  %v2021_v47 = vld [vmem:[%s4270_s3 + $0x508] sm:$0xff] }
 0x493   :  { %1109 = vmatpush.msra.mxu3 %v2037_v5  ;;  %v2052_v5 = vld [vmem:[%s4267_s0 + $0x48] sm:$0xff] }
 0x494   :  { %1142 = vmatpush.bf16.msrb.mxu0 %v3262_v25  ;;  %1155 = vmatpush.bf16.msrb.mxu1 %v3268_v26 }
 0x495   :  { %1092 = vmatpush.msra.mxu2 %v2030_v14  ;;  %1110 = vmatpush.msra.mxu3 %v2035_v17  ;;  %v1129_v14 = vunpack.c.l.b16 %v2052_v5  ;;  %v1130_v17 = vunpack.c.h.b16 %v2052_v5  ;;  %v2078_v5 = vld [vmem:[%s4270_s3 + $0x6c0] sm:$0xff] }
 0x497   :  { %1093 = vmatpush.msra.mxu2 %v2028_v21  ;;  %v1132_v21 = vpack.c.b16 %v1129_v14, %v1129_v14  ;;  %v2085_v14 = vld [vmem:[%s4270_s3 + $0x6f8] sm:$0xff] }
 0x498   :  { %1143 = vmatpush.bf16.msrb.mxu0 %v3274_v37  ;;  %1156 = vmatpush.bf16.msrb.mxu1 %v3280_v38 }
 0x499   :  { %1094 = vmatpush.msra.mxu2 %v2026_v33 }
 0x49b   :  { %1095 = vmatpush.msra.mxu2 %v2024_v12  ;;  %v3621_v12 = vld [vmem:[%s4269_s6] ss:$0 sm:$0xff] }
 0x49c   :  { %1144 = vmatpush.bf16.msrb.mxu0 %v3286_v39  ;;  %1157 = vmatpush.bf16.msrb.mxu1 %v3292_v41 }
 0x49d   :  { %1096 = vmatpush.msra.mxu2 %v2022_v29 }
 0x49f   :  { %1097 = vmatpush.msra.mxu2 %v2020_v45 }
 0x4a0   :  { %1145 = vmatpush.bf16.msrb.mxu0 %v3298_v43  ;;  %1158 = vmatpush.bf16.msrb.mxu1 %v3304_v62 }
 0x4a1   :  { %1164 = vmatpush.bf16.msrb.mxu2 %v3085_v48 }
 0x4a3   :  { %1146 = vmatmul.bf16.vlgmr.msrb.gmra.mxu0 %v1132_v21  ;;  %v2076_v21 = vld [vmem:[%s4270_s3 + $0x6b0] sm:$0xff] }
 0x4a5   :  { %1165 = vmatpush.bf16.msrb.mxu2 %v3091_v50 }
 0x4a9   :  { %1166 = vmatpush.bf16.msrb.mxu2 %v3097_v52 }
 0x4ad   :  { %1167 = vmatpush.bf16.msrb.mxu2 %v3103_v57 }
 0x4b1   :  { %1168 = vmatpush.bf16.msrb.mxu2 %v3109_v59 }
 0x4b5   :  { %1169 = vmatpush.bf16.msrb.mxu2 %v3115_v61 }
 0x4b9   :  { %1170 = vmatpush.bf16.msrb.mxu2 %v3121_v58 }
 0x4bd   :  { %1171 = vmatpush.bf16.msrb.mxu2 %v3127_v2 }
 0x500   :  { %v950_v63 = vpop.f32.mrf.mxu0  ;;  %v3608_v33 = vpop.f32.mrf.mxu1 }
 0x501   :  { %v3542_v8 = vadd.f32 %v950_v63, %v3365_v20  ;;  %v2033_v20 = vld [vmem:[%s4270_s3 + $0x568] sm:$0xff]  ;;  %v2023_v63 = vld [vmem:[%s4270_s3 + $0x518] sm:$0xff] }
 0x502   :  { %1111 = vmatpush.msra.mxu3 %v2033_v20  ;;  %v1133_v20 = vpack.c.b16 %v1130_v17, %v1130_v17  ;;  %v2083_v17 = vld [vmem:[%s4270_s3 + $0x6e8] sm:$0xff] }
 0x504   :  { %1112 = vmatpush.msra.mxu3 %v2031_v10 }
 0x506   :  { %1113 = vmatpush.msra.mxu3 %v2029_v13 }
 0x508   :  { %v1024_v32 = vpop.f32.mrf.mxu0  ;;  %1114 = vmatpush.msra.mxu3 %v2027_v31 }
 0x509   :  { %v1025_v24 = vadd.f32 %v1024_v32, %v3473_v23  ;;  %v2025_v23 = vld [vmem:[%s4270_s3 + $0x528] sm:$0xff]  ;;  %v2053_v32 = vld [vmem:[%s4267_s0 + $0x50] sm:$0xf] }
 0x50a   :  { %1115 = vmatpush.msra.mxu3 %v2025_v23 }
 0x50b   :  { %v1028_v30 = vmax.f32 %v1025_v24, 0.0  ;;  %v1131_v24 = vunpack.c.l.b16 %v2053_v32  ;;  %v2079_v32 = vld [vmem:[%s4270_s3 + $0x6c8] sm:$0xff] }
 0x50c   :  { %1116 = vmatpush.msra.mxu3 %v2023_v63  ;;  %v2082_v63 = vld [vmem:[%s4270_s3 + $0x6e0] sm:$0xff] }
 0x50d   :  { %1045 = vmatmul.f32.vlgmr.msra.gmra.mxu1 %v1028_v30  ;;  %v1134_v29 = vpack.c.b16 %v1131_v24, %v1131_v24  ;;  %v2077_v24 = vld [vmem:[%s4270_s3 + $0x6b8] sm:$0xff] }
 0x50e   :  { %1117 = vmatpush.msra.mxu3 %v2021_v47  ;;  %v2080_v47 = vld [vmem:[%s4270_s3 + $0x6d0] sm:$0xff]  ;;  %1251 = vmatpush.msra.mxu1 %v2085_v14 }
 0x510   :  { %v1026_v60 = vpop.f32.mrf.mxu0  ;;  %1178 = vmatpush.msrb.mxu3 %v3142_v28  ;;  %1252 = vmatpush.msra.mxu1 %v2083_v17  ;;  %v2066_v17 = vld [vmem:[%s4270_s3 + $0x660] sm:$0xff] }
 0x511   :  { %v2084_v60 = vld [vmem:[%s4270_s3 + $0x6f0] sm:$0xff] }
 0x512   :  { %1179 = vmatpush.msrb.mxu3 %v3148_v34  ;;  %1231 = vmatpush.msra.mxu0 %v2084_v60 }
 0x514   :  { %1180 = vmatpush.msrb.mxu3 %v3154_v35  ;;  %1232 = vmatpush.msra.mxu0 %v2082_v63  ;;  %v2068_v63 = vld [vmem:[%s4270_s3 + $0x670] sm:$0xff] }
 0x515   :  { %1159 = vmatmul.bf16.vlgmr.msrb.gmra.mxu1 %v1133_v20  ;;  %v2081_v20 = vld [vmem:[%s4270_s3 + $0x6d8] sm:$0xff] }
 0x516   :  { %1181 = vmatpush.msrb.mxu3 %v3160_v36  ;;  %1233 = vmatpush.msra.mxu0 %v2080_v47  ;;  %v2073_v47 = vld [vmem:[%s4270_s3 + $0x698] sm:$0xff] }
 0x517   :  { %1253 = vmatpush.msra.mxu1 %v2081_v20 }
 0x518   :  { %1182 = vmatpush.msrb.mxu3 %v3166_v0  ;;  %1234 = vmatpush.msra.mxu0 %v2078_v5 }
 0x519   :  { %1254 = vmatpush.msra.mxu1 %v2079_v32  ;;  %v2069_v32 = vld [vmem:[%s4270_s3 + $0x678] sm:$0xff] }
 0x51a   :  { %1183 = vmatpush.msrb.mxu3 %v3172_v1  ;;  %1235 = vmatpush.msra.mxu0 %v2076_v21  ;;  %v2071_v21 = vld [vmem:[%s4270_s3 + $0x688] sm:$0xff] }
 0x51b   :  { %1255 = vmatpush.msra.mxu1 %v2077_v24 }
 0x51c   :  { %1184 = vmatpush.msrb.mxu3 %v3178_v3 }
 0x51e   :  { %1185 = vmatpush.msrb.mxu3 %v3184_v4 }
 0x520   :  { %1186 = vmatpush.msrb.mxu3 %v3190_v6  ;;  %v1147_v30 = vpop.f32.mrf.mxu0 }
 0x522   :  { %1187 = vmatpush.msrb.mxu3 %v3196_v7 }
 0x524   :  { %1188 = vmatpush.msrb.mxu3 %v3430_v44 }
 0x526   :  { %1189 = vmatpush.msrb.mxu3 %v3438_v53 }
 0x528   :  { %1190 = vmatpush.msrb.mxu3 %v3444_v22  ;;  %v1149_v45 = vpop.f32.mrf.mxu0 }
 0x529   :  { %v2075_v45 = vld [vmem:[%s4270_s3 + $0x6a8] sm:$0xff] }
 0x52a   :  { %1191 = vmatpush.msrb.mxu3 %v3450_v27  ;;  %1256 = vmatpush.msra.mxu1 %v2075_v45  ;;  %v2065_v45 = vld [vmem:[%s4270_s3 + $0x658] sm:$0xff] }
 0x52c   :  { %1192 = vmatpush.msrb.mxu3 %v3456_v40  ;;  %1257 = vmatpush.msra.mxu1 %v2073_v47  ;;  %v2056_v47 = vld [vmem:[%s4270_s3 + $0x610] sm:$0xff] }
 0x52e   :  { %1193 = vmatpush.msrb.mxu3 %v3466_v42  ;;  %1258 = vmatpush.msra.mxu1 %v2071_v21 }
 0x530   :  { %1259 = vmatpush.msra.mxu1 %v2069_v32 }
 0x58a   :  { %v1046_v10 = vpop.f32.mrf.mxu1 }
 0x58b   :  { %v1047_v13 = vadd.f32 %v3621_v12, %v1046_v10  ;;  %v2074_v10 = vld [vmem:[%s4270_s3 + $0x6a0] sm:$0xff] }
 0x58c   :  { %1236 = vmatpush.msra.mxu0 %v2074_v10  ;;  %v2064_v10 = vld [vmem:[%s4270_s3 + $0x650] sm:$0xff] }
 0x58d   :  { %1098 = vmatmul.f32.vlgmr.msra.gmra.mxu2 %v1047_v13  ;;  %1118 = vmatmul.f32.vlgmr.msra.gmra.mxu3 %v1047_v13  ;;  %v2072_v13 = vld [vmem:[%s4270_s3 + $0x690] sm:$0xff] }
 0x58e   :  { %1287 = vmatpush.bf16.msra.mxu2 %v3214_v46  ;;  %1300 = vmatpush.bf16.msra.mxu3 %v3220_v49 }
 0x58f   :  { %1237 = vmatpush.msra.mxu0 %v2072_v13  ;;  %v2062_v13 = vld [vmem:[%s4270_s3 + $0x640] sm:$0xff] }
 0x592   :  { %1288 = vmatpush.bf16.msra.mxu2 %v3226_v54  ;;  %1301 = vmatpush.bf16.msra.mxu3 %v3232_v55  ;;  %v1160_v31 = vpop.f32.mrf.mxu1 }
 0x593   :  { %v1161_v24 = vadd.f32 %v1160_v31, %v1147_v30  ;;  %v2063_v30 = vld [vmem:[%s4270_s3 + $0x648] sm:$0xff] }
 0x595   :  { %1172 = vmatmul.bf16.vlgmr.msrb.gmra.mxu2 %v1134_v29  ;;  %v2070_v29 = vld [vmem:[%s4270_s3 + $0x680] sm:$0xff] }
 0x596   :  { %1289 = vmatpush.bf16.msra.mxu2 %v3238_v15  ;;  %1302 = vmatpush.bf16.msra.mxu3 %v3244_v16 }
 0x597   :  { %1238 = vmatpush.msra.mxu0 %v2070_v29  ;;  %v2060_v29 = vld [vmem:[%s4270_s3 + $0x630] sm:$0xff] }
 0x599   :  { %1239 = vmatpush.msra.mxu0 %v2068_v63  ;;  %v2058_v63 = vld [vmem:[%s4270_s3 + $0x620] sm:$0xff] }
 0x59a   :  { %1290 = vmatpush.bf16.msra.mxu2 %v3250_v18  ;;  %1303 = vmatpush.bf16.msra.mxu3 %v3256_v19  ;;  %v1162_v23 = vpop.f32.mrf.mxu1 }
 0x59b   :  { %v2086_v23 = vld [vmem:[%s4267_s0 + $0x54] sm:$0xff]  ;;  %1240 = vmatpush.msra.mxu0 %v2066_v17  ;;  %v2054_v17 = vld [vmem:[%s4270_s3 + $0x600] sm:$0xff] }
 0x59c   :  { %v1278_v60 = vunpack.c.l.b16 %v2086_v23  ;;  %v1279_v21 = vunpack.c.h.b16 %v2086_v23  ;;  %v2103_v23 = vld [vmem:[%s4270_s3 + $0x778] sm:$0xff] }
 0x59d   :  { %1241 = vmatpush.msra.mxu0 %v2064_v10  ;;  %v2059_v10 = vld [vmem:[%s4270_s3 + $0x628] sm:$0xff] }
 0x59e   :  { %1291 = vmatpush.bf16.msra.mxu2 %v3262_v25  ;;  %1304 = vmatpush.bf16.msra.mxu3 %v3268_v26  ;;  %v1281_v5 = vpack.c.b16 %v1278_v60, %v1278_v60 }
 0x59f   :  { %1242 = vmatpush.msra.mxu0 %v2062_v13  ;;  %v1282_v13 = vpack.c.b16 %v1279_v21, %v1279_v21 }
 0x5a1   :  { %1243 = vmatpush.msra.mxu0 %v2060_v29  ;;  %v2099_v29 = vld [vmem:[%s4270_s3 + $0x758] sm:$0xff] }
 0x5a2   :  { %1292 = vmatpush.bf16.msra.mxu2 %v3274_v37  ;;  %1305 = vmatpush.bf16.msra.mxu3 %v3280_v38 }
 0x5a3   :  { %1244 = vmatpush.msra.mxu0 %v2058_v63  ;;  %v2097_v63 = vld [vmem:[%s4270_s3 + $0x748] sm:$0xff] }
 0x5a5   :  { %1245 = vmatpush.msra.mxu0 %v2056_v47 }
 0x5a6   :  { %1293 = vmatpush.bf16.msra.mxu2 %v3286_v39  ;;  %1306 = vmatpush.bf16.msra.mxu3 %v3292_v41 }
 0x5a7   :  { %1246 = vmatpush.msra.mxu0 %v2054_v17  ;;  %v2093_v17 = vld [vmem:[%s4270_s3 + $0x728] sm:$0xff] }
 0x5a9   :  { %1313 = vmatpush.bf16.msrb.mxu0 %v3085_v48  ;;  %v2057_v48 = vld [vmem:[%s4270_s3 + $0x618] sm:$0xff] }
 0x5aa   :  { %1294 = vmatpush.bf16.msra.mxu2 %v3298_v43  ;;  %1307 = vmatpush.bf16.msra.mxu3 %v3304_v62 }
 0x5ad   :  { %1295 = vmatmul.bf16.vlgmr.msra.gmra.mxu2 %v1281_v5  ;;  %1314 = vmatpush.bf16.msrb.mxu0 %v3091_v50  ;;  %v2055_v50 = vld [vmem:[%s4270_s3 + $0x608] sm:$0xff] }
 0x5b1   :  { %1315 = vmatpush.bf16.msrb.mxu0 %v3097_v52 }
 0x5b5   :  { %1316 = vmatpush.bf16.msrb.mxu0 %v3103_v57 }
 0x5b9   :  { %1317 = vmatpush.bf16.msrb.mxu0 %v3109_v59 }
 0x5bd   :  { %1318 = vmatpush.bf16.msrb.mxu0 %v3115_v61 }
 0x5c1   :  { %1319 = vmatpush.bf16.msrb.mxu0 %v3121_v58  ;;  %v2087_v58 = vld [vmem:[%s4267_s0 + $0x5c] sm:$0xf] }
 0x5c5   :  { %1320 = vmatpush.bf16.msrb.mxu0 %v3127_v2 }
 0x610   :  { %v1099_v14 = vpop.f32.mrf.mxu2  ;;  %v3762_v57 = vpop.f32.mrf.mxu3 }
 0x611   :  { %v3699_v20 = vadd.f32 %v1099_v14, %v3542_v8  ;;  %v2067_v8 = vld [vmem:[%s4270_s3 + $0x668] sm:$0xff]  ;;  %v2061_v14 = vld [vmem:[%s4270_s3 + $0x638] sm:$0xff] }
 0x612   :  { %1260 = vmatpush.msra.mxu1 %v2067_v8  ;;  %v2096_v8 = vld [vmem:[%s4270_s3 + $0x740] sm:$0xff] }
 0x614   :  { %1261 = vmatpush.msra.mxu1 %v2065_v45 }
 0x616   :  { %1262 = vmatpush.msra.mxu1 %v2063_v30 }
 0x618   :  { %v1173_v60 = vpop.f32.mrf.mxu2  ;;  %1263 = vmatpush.msra.mxu1 %v2061_v14  ;;  %v2088_v14 = vld [vmem:[%s4270_s3 + $0x700] sm:$0xff] }
 0x619   :  { %v1174_v31 = vadd.f32 %v1173_v60, %v1161_v24  ;;  %v2094_v24 = vld [vmem:[%s4270_s3 + $0x730] sm:$0xff]  ;;  %v2092_v60 = vld [vmem:[%s4270_s3 + $0x720] sm:$0xff] }
 0x61a   :  { %1264 = vmatpush.msra.mxu1 %v2059_v10  ;;  %v2226_v10 = vld [vmem:[%s4266_s1 + $0xb8] sm:$0xff] }
 0x61b   :  { %v1177_v5 = vmax.f32 %v1174_v31, 0.0  ;;  %v2090_v31 = vld [vmem:[%s4270_s3 + $0x710] sm:$0xff] }
 0x61c   :  { %1265 = vmatpush.msra.mxu1 %v2057_v48  ;;  %v2229_v48 = vld [vmem:[%s4266_s1 + $0xa0] sm:$0xff] }
 0x61d   :  { %1194 = vmatmul.f32.vlgmr.msrb.gmra.mxu3 %v1177_v5  ;;  %v2095_v5 = vld [vmem:[%s4270_s3 + $0x738] sm:$0xff] }
 0x61e   :  { %1266 = vmatpush.msra.mxu1 %v2055_v50  ;;  %v2230_v50 = vld [vmem:[%s4266_s1 + $0x98] sm:$0xff] }
 0x620   :  { %v1175_v32 = vpop.f32.mrf.mxu2  ;;  %1327 = vmatpush.msrb.mxu1 %v3142_v28  ;;  %v1280_v28 = vunpack.c.l.b16 %v2087_v58  ;;  %v2091_v58 = vld [vmem:[%s4270_s3 + $0x718] sm:$0xff] }
 0x621   :  { %v2227_v32 = vld [vmem:[%s4266_s1 + $0xb0] sm:$0xff] }
 0x622   :  { %1328 = vmatpush.msrb.mxu1 %v3148_v34  ;;  %v1283_v34 = vpack.c.b16 %v1280_v28, %v1280_v28  ;;  %v2120_v28 = vld [vmem:[%s4267_s0 + $0x60] sm:$0xff] }
 0x624   :  { %1329 = vmatpush.msrb.mxu1 %v3154_v35 }
 0x625   :  { %1308 = vmatmul.bf16.vlgmr.msra.gmra.mxu3 %v1282_v13  ;;  %v2228_v13 = vld [vmem:[%s4266_s1 + $0xa8] sm:$0xff] }
 0x626   :  { %1330 = vmatpush.msrb.mxu1 %v3160_v36 }
 0x628   :  { %1331 = vmatpush.msrb.mxu1 %v3166_v0 }
 0x62a   :  { %1332 = vmatpush.msrb.mxu1 %v3172_v1  ;;  %v2118_v1 = vld [vmem:[%s4270_s3 + $0x7f0] sm:$0xff] }
 0x62b   :  { %1380 = vmatpush.msrb.mxu2 %v2118_v1 }
 0x62c   :  { %1333 = vmatpush.msrb.mxu1 %v3178_v3  ;;  %v2116_v3 = vld [vmem:[%s4270_s3 + $0x7e0] sm:$0xff] }
 0x62d   :  { %1381 = vmatpush.msrb.mxu2 %v2116_v3  ;;  %v2235_v3 = vld [vmem:[%s4268_s2 + $0x70] sm:$0xff] }
 0x62e   :  { %1334 = vmatpush.msrb.mxu1 %v3184_v4  ;;  %v2114_v4 = vld [vmem:[%s4270_s3 + $0x7d0] sm:$0xff] }
 0x62f   :  { %1382 = vmatpush.msrb.mxu2 %v2114_v4  ;;  %v2236_v4 = vld [vmem:[%s4268_s2 + $0x68] sm:$0xff] }
 0x630   :  { %1335 = vmatpush.msrb.mxu1 %v3190_v6  ;;  %v1296_v52 = vpop.f32.mrf.mxu2  ;;  %v2112_v6 = vld [vmem:[%s4270_s3 + $0x7c0] sm:$0xff] }
 0x631   :  { %1383 = vmatpush.msrb.mxu2 %v2112_v6  ;;  %v2237_v6 = vld [vmem:[%s4268_s2 + $0x60] sm:$0xff] }
 0x632   :  { %1336 = vmatpush.msrb.mxu1 %v3196_v7  ;;  %v2119_v7 = vld [vmem:[%s4270_s3 + $0x7f8] sm:$0xff] }
 0x633   :  { %1400 = vmatpush.msrb.mxu3 %v2119_v7  ;;  %v2238_v7 = vld [vmem:[%s4268_s2 + $0x58] sm:$0xff] }
 0x634   :  { %1337 = vmatpush.msrb.mxu1 %v3430_v44 }
 0x636   :  { %1338 = vmatpush.msrb.mxu1 %v3438_v53 }
 0x638   :  { %1339 = vmatpush.msrb.mxu1 %v3444_v22  ;;  %v1298_v59 = vpop.f32.mrf.mxu2 }
 0x639   :  { %v2232_v59 = vld [vmem:[%s4266_s1 + $0x88] sm:$0xff] }
 0x63a   :  { %1340 = vmatpush.msrb.mxu1 %v3450_v27 }
 0x63c   :  { %1341 = vmatpush.msrb.mxu1 %v3456_v40 }
 0x63e   :  { %1342 = vmatpush.msrb.mxu1 %v3466_v42 }
 0x6a0   :  { %v1195_v61 = vpop.f32.mrf.mxu3 }
 0x6a1   :  { %v1196_v2 = vadd.f32 %v3621_v12, %v1195_v61  ;;  %v2233_v61 = vld [vmem:[%s4266_s1 + $0x80] sm:$0xff] }
 0x6a3   :  { %1247 = vmatmul.f32.vlgmr.msra.gmra.mxu0 %v1196_v2  ;;  %1267 = vmatmul.f32.vlgmr.msra.gmra.mxu1 %v1196_v2  ;;  %v2089_v2 = vld [vmem:[%s4270_s3 + $0x708] sm:$0xff] }
 0x6a4   :  { %1436 = vmatpush.bf16.msra.mxu0 %v3214_v46  ;;  %1449 = vmatpush.bf16.msra.mxu1 %v3220_v49  ;;  %v2117_v46 = vld [vmem:[%s4270_s3 + $0x7e8] sm:$0xff]  ;;  %v2110_v49 = vld [vmem:[%s4270_s3 + $0x7b0] sm:$0xff] }
 0x6a5   :  { %1401 = vmatpush.msrb.mxu3 %v2117_v46  ;;  %1384 = vmatpush.msrb.mxu2 %v2110_v49  ;;  %v2239_v46 = vld [vmem:[%s4268_s2 + $0x50] sm:$0xff]  ;;  %v2240_v49 = vld [vmem:[%s4268_s2 + $0x48] sm:$0xff] }
 0x6a8   :  { %v1309_v35 = vpop.f32.mrf.mxu3  ;;  %1437 = vmatpush.bf16.msra.mxu0 %v3226_v54  ;;  %1450 = vmatpush.bf16.msra.mxu1 %v3232_v55  ;;  %v2115_v54 = vld [vmem:[%s4270_s3 + $0x7d8] sm:$0xff]  ;;  %v2108_v55 = vld [vmem:[%s4270_s3 + $0x7a0] sm:$0xff] }
 0x6a9   :  { %v3777_v36 = vadd.f32 %v1309_v35, %v1296_v52  ;;  %1402 = vmatpush.msrb.mxu3 %v2115_v54  ;;  %1385 = vmatpush.msrb.mxu2 %v2108_v55  ;;  %v2231_v52 = vld [vmem:[%s4266_s1 + $0x90] sm:$0xff]  ;;  %v1428_v35 = vunpack.c.h.b16 %v2120_v28  ;;  %v2241_v54 = vld [vmem:[%s4268_s2 + $0x40] sm:$0xff]  ;;  %v2242_v55 = vld [vmem:[%s4268_s2 + $0x38] sm:$0xff] }
 0x6ab   :  { %1321 = vmatmul.bf16.vlgmr.msrb.gmra.mxu0 %v1283_v34  ;;  %v1427_v34 = vunpack.c.l.b16 %v2120_v28  ;;  %v1431_v1 = vpack.c.b16 %v1428_v35, %v1428_v35 }
 0x6ac   :  { %1438 = vmatpush.bf16.msra.mxu0 %v3238_v15  ;;  %1451 = vmatpush.bf16.msra.mxu1 %v3244_v16  ;;  %v2113_v15 = vld [vmem:[%s4270_s3 + $0x7c8] sm:$0xff]  ;;  %v2106_v16 = vld [vmem:[%s4270_s3 + $0x790] sm:$0xff] }
 0x6ad   :  { %1403 = vmatpush.msrb.mxu3 %v2113_v15  ;;  %1386 = vmatpush.msrb.mxu2 %v2106_v16  ;;  %v2243_v15 = vld [vmem:[%s4268_s2 + $0x30] sm:$0xff] }
 0x6b0   :  { %v1311_v0 = vpop.f32.mrf.mxu3  ;;  %1439 = vmatpush.bf16.msra.mxu0 %v3250_v18  ;;  %1452 = vmatpush.bf16.msra.mxu1 %v3256_v19  ;;  %v2111_v18 = vld [vmem:[%s4270_s3 + $0x7b8] sm:$0xff]  ;;  %v2104_v19 = vld [vmem:[%s4270_s3 + $0x780] sm:$0xff] }
 0x6b1   :  { %1404 = vmatpush.msrb.mxu3 %v2111_v18  ;;  %1387 = vmatpush.msrb.mxu2 %v2104_v19  ;;  %v1430_v0 = vpack.c.b16 %v1427_v34, %v1427_v34  ;;  %v2121_v19 = vld [vmem:[%s4267_s0 + $0x68] sm:$0xf] }
 0x6b4   :  { %1440 = vmatpush.bf16.msra.mxu0 %v3262_v25  ;;  %1453 = vmatpush.bf16.msra.mxu1 %v3268_v26  ;;  %v2109_v25 = vld [vmem:[%s4270_s3 + $0x7a8] sm:$0xff]  ;;  %v2102_v26 = vld [vmem:[%s4270_s3 + $0x770] sm:$0xff] }
 0x6b5   :  { %1405 = vmatpush.msrb.mxu3 %v2109_v25  ;;  %1388 = vmatpush.msrb.mxu2 %v2102_v26 }
 0x6b8   :  { %1441 = vmatpush.bf16.msra.mxu0 %v3274_v37  ;;  %1454 = vmatpush.bf16.msra.mxu1 %v3280_v38  ;;  %v2107_v37 = vld [vmem:[%s4270_s3 + $0x798] sm:$0xff] }
 0x6b9   :  { %1406 = vmatpush.msrb.mxu3 %v2107_v37 }
 0x6bc   :  { %1442 = vmatpush.bf16.msra.mxu0 %v3286_v39  ;;  %1455 = vmatpush.bf16.msra.mxu1 %v3292_v41  ;;  %v2100_v39 = vld [vmem:[%s4270_s3 + $0x760] sm:$0xff]  ;;  %v2105_v41 = vld [vmem:[%s4270_s3 + $0x788] sm:$0xff] }
 0x6bd   :  { %1389 = vmatpush.msrb.mxu2 %v2100_v39  ;;  %1407 = vmatpush.msrb.mxu3 %v2105_v41  ;;  %v2151_v39 = vld [vmem:[%s4270_s3 + $0x8e8] sm:$0xff]  ;;  %v2148_v41 = vld [vmem:[%s4270_s3 + $0x8d0] sm:$0xff] }
 0x6bf   :  { %1408 = vmatpush.msrb.mxu3 %v2103_v23  ;;  %v2146_v23 = vld [vmem:[%s4270_s3 + $0x8c0] sm:$0xff] }
 0x6c0   :  { %1443 = vmatpush.bf16.msra.mxu0 %v3298_v43  ;;  %1456 = vmatpush.bf16.msra.mxu1 %v3304_v62  ;;  %v2098_v62 = vld [vmem:[%s4270_s3 + $0x750] sm:$0xff] }
 0x6c1   :  { %1390 = vmatpush.msrb.mxu2 %v2098_v62  ;;  %v2149_v62 = vld [vmem:[%s4270_s3 + $0x8d8] sm:$0xff] }
 0x6c3   :  { %1391 = vmatpush.msrb.mxu2 %v2096_v8  ;;  %1444 = vmatmul.bf16.vlgmr.msra.gmra.mxu0 %v1430_v0  ;;  %v2147_v8 = vld [vmem:[%s4270_s3 + $0x8c8] sm:$0xff]  ;;  %v2125_v0 = vld [vmem:[%s4270_s3 + $0x818] sm:$0xff] }
 0x6c5   :  { %1392 = vmatpush.msrb.mxu2 %v2094_v24  ;;  %v2145_v24 = vld [vmem:[%s4270_s3 + $0x8b8] sm:$0xff] }
 0x6c7   :  { %1393 = vmatpush.msrb.mxu2 %v2092_v60  ;;  %v2140_v60 = vld [vmem:[%s4270_s3 + $0x890] sm:$0xff] }
 0x6c9   :  { %1394 = vmatpush.msrb.mxu2 %v2090_v31  ;;  %v2139_v31 = vld [vmem:[%s4270_s3 + $0x888] sm:$0xff] }
 0x6cb   :  { %1395 = vmatpush.msrb.mxu2 %v2088_v14 }
 0x6cd   :  { %1462 = vmatpush.bf16.msra.mxu2 %v2226_v10 }
 0x6d1   :  { %1463 = vmatpush.bf16.msra.mxu2 %v2227_v32  ;;  %v2132_v32 = vld [vmem:[%s4270_s3 + $0x850] sm:$0xff] }
 0x6d5   :  { %1464 = vmatpush.bf16.msra.mxu2 %v2228_v13  ;;  %v2133_v13 = vld [vmem:[%s4270_s3 + $0x858] sm:$0xff] }
 0x6d9   :  { %1465 = vmatpush.bf16.msra.mxu2 %v2229_v48  ;;  %v2130_v48 = vld [vmem:[%s4270_s3 + $0x840] sm:$0xff] }
 0x6dd   :  { %1466 = vmatpush.bf16.msra.mxu2 %v2230_v50 }
 0x6e1   :  { %1467 = vmatpush.bf16.msra.mxu2 %v2231_v52  ;;  %v2128_v52 = vld [vmem:[%s4270_s3 + $0x830] sm:$0xff] }
 0x6e5   :  { %1468 = vmatpush.bf16.msra.mxu2 %v2232_v59  ;;  %v2129_v59 = vld [vmem:[%s4270_s3 + $0x838] sm:$0xff] }
 0x6e9   :  { %1469 = vmatpush.bf16.msra.mxu2 %v2233_v61 }
 0x720   :  { %v1248_v38 = vpop.f32.mrf.mxu0  ;;  %v3948_v16 = vpop.f32.mrf.mxu1 }
 0x721   :  { %v3846_v43 = vadd.f32 %v1248_v38, %v3699_v20  ;;  %v2101_v20 = vld [vmem:[%s4270_s3 + $0x768] sm:$0xff]  ;;  %v2152_v38 = vld [vmem:[%s4270_s3 + $0x8f0] sm:$0xff] }
 0x722   :  { %1409 = vmatpush.msrb.mxu3 %v2101_v20  ;;  %1529 = vmatpush.msrb.mxu0 %v2152_v38  ;;  %v2144_v20 = vld [vmem:[%s4270_s3 + $0x8b0] sm:$0xff] }
 0x723   :  { %v1596_v38 = vld [vmem:[%s4271_s4 + $0x70] sm:$0xff] }
 0x724   :  { %1410 = vmatpush.msrb.mxu3 %v2099_v29  ;;  %v2142_v29 = vld [vmem:[%s4270_s3 + $0x8a0] sm:$0xff] }
 0x726   :  { %1411 = vmatpush.msrb.mxu3 %v2097_v63  ;;  %v2141_v63 = vld [vmem:[%s4270_s3 + $0x898] sm:$0xff] }
 0x728   :  { %v1322_v45 = vpop.f32.mrf.mxu0  ;;  %1412 = vmatpush.msrb.mxu3 %v2095_v5  ;;  %v2137_v5 = vld [vmem:[%s4270_s3 + $0x878] sm:$0xff] }
 0x729   :  { %v1323_v30 = vadd.f32 %v1322_v45, %v3777_v36  ;;  %v2234_v36 = vld [vmem:[%s4268_s2 + $0x78] sm:$0xff]  ;;  %v2143_v45 = vld [vmem:[%s4270_s3 + $0x8a8] sm:$0xff] }
 0x72a   :  { %1413 = vmatpush.msrb.mxu3 %v2093_v17  ;;  %v2134_v17 = vld [vmem:[%s4270_s3 + $0x860] sm:$0xff] }
 0x72b   :  { %v1326_v47 = vmax.f32 %v1323_v30, 0.0  ;;  %v2138_v30 = vld [vmem:[%s4270_s3 + $0x880] sm:$0xff] }
 0x72c   :  { %1414 = vmatpush.msrb.mxu3 %v2091_v58  ;;  %v2126_v58 = vld [vmem:[%s4270_s3 + $0x820] sm:$0xff] }
 0x72d   :  { %1343 = vmatmul.f32.vlgmr.msrb.gmra.mxu1 %v1326_v47  ;;  %v2136_v47 = vld [vmem:[%s4270_s3 + $0x870] sm:$0xff] }
 0x72e   :  { %1415 = vmatpush.msrb.mxu3 %v2089_v2  ;;  %v2127_v2 = vld [vmem:[%s4270_s3 + $0x828] sm:$0xff] }
 0x730   :  { %v1324_v21 = vpop.f32.mrf.mxu0  ;;  %1476 = vmatpush.msra.mxu3 %v2234_v36  ;;  %v2124_v36 = vld [vmem:[%s4270_s3 + $0x810] sm:$0xff] }
 0x731   :  { %v2135_v21 = vld [vmem:[%s4270_s3 + $0x868] sm:$0xff] }
 0x732   :  { %1477 = vmatpush.msra.mxu3 %v2235_v3  ;;  %v2123_v3 = vld [vmem:[%s4270_s3 + $0x808] sm:$0xff] }
 0x734   :  { %1478 = vmatpush.msra.mxu3 %v2236_v4  ;;  %v1612_v4 = vld [vmem:[%s4271_s4 + $0xf0] sm:$0xff] }
 0x735   :  { %1457 = vmatmul.bf16.vlgmr.msra.gmra.mxu1 %v1431_v1  ;;  %v2122_v1 = vld [vmem:[%s4270_s3 + $0x800] sm:$0xff] }
 0x736   :  { %1479 = vmatpush.msra.mxu3 %v2237_v6  ;;  %v1620_v6 = vld [vmem:[%s4271_s4 + $0x130] sm:$0xff] }
 0x738   :  { %1480 = vmatpush.msra.mxu3 %v2238_v7  ;;  %v1610_v7 = vld [vmem:[%s4271_s4 + $0xe0] sm:$0xff] }
 0x73a   :  { %1481 = vmatpush.msra.mxu3 %v2239_v46  ;;  %v1618_v46 = vld [vmem:[%s4271_s4 + $0x120] sm:$0xff] }
 0x73c   :  { %1482 = vmatpush.msra.mxu3 %v2240_v49  ;;  %v1608_v49 = vld [vmem:[%s4271_s4 + $0xd0] sm:$0xff] }
 0x73e   :  { %1483 = vmatpush.msra.mxu3 %v2241_v54  ;;  %v1616_v54 = vld [vmem:[%s4271_s4 + $0x110] sm:$0xff] }
 0x740   :  { %1484 = vmatpush.msra.mxu3 %v2242_v55  ;;  %v1606_v55 = vld [vmem:[%s4271_s4 + $0xc0] sm:$0xff] }
 0x742   :  { %1485 = vmatpush.msra.mxu3 %v2243_v15  ;;  %v1614_v15 = vld [vmem:[%s4271_s4 + $0x100] sm:$0xff] }
 0x744   :  { %1486 = vmatpush.msra.mxu3 %v3430_v44  ;;  %v1429_v44 = vunpack.c.l.b16 %v2121_v19  ;;  %v1604_v19 = vld [vmem:[%s4271_s4 + $0xb0] sm:$0xff] }
 0x746   :  { %1487 = vmatpush.msra.mxu3 %v3438_v53  ;;  %v1432_v26 = vpack.c.b16 %v1429_v44, %v1429_v44  ;;  %v1445_v53 = vpop.f32.mrf.mxu0  ;;  %v1602_v44 = vld [vmem:[%s4271_s4 + $0xa0] sm:$0xff] }
 0x748   :  { %1488 = vmatpush.msra.mxu3 %v3444_v22 }
 0x74a   :  { %1489 = vmatpush.msra.mxu3 %v3450_v27 }
 0x74c   :  { %1490 = vmatpush.msra.mxu3 %v3456_v40  ;;  %v2153_v40 = vld [vmem:[%s4270_s3 + $0x8f8] sm:$0xff] }
 0x74d   :  { %1549 = vmatpush.msrb.mxu1 %v2153_v40  ;;  %v1603_v40 = vld [vmem:[%s4271_s4 + $0xa8] sm:$0xff] }
 0x74e   :  { %1491 = vmatpush.msra.mxu3 %v3466_v42  ;;  %v1447_v37 = vpop.f32.mrf.mxu0  ;;  %v2150_v42 = vld [vmem:[%s4270_s3 + $0x8e0] sm:$0xff] }
 0x74f   :  { %1530 = vmatpush.msrb.mxu0 %v2150_v42  ;;  %1550 = vmatpush.msrb.mxu1 %v2151_v39  ;;  %v1598_v37 = vld [vmem:[%s4271_s4 + $0x80] sm:$0xff]  ;;  %v1601_v39 = vld [vmem:[%s4271_s4 + $0x98] sm:$0xff] }
 0x750   :  { %v1594_v42 = vld [vmem:[%s4271_s4 + $0x60] sm:$0xff] }
 0x751   :  { %1531 = vmatpush.msrb.mxu0 %v2148_v41  ;;  %1551 = vmatpush.msrb.mxu1 %v2149_v62  ;;  %v1592_v41 = vld [vmem:[%s4271_s4 + $0x50] sm:$0xff]  ;;  %v1599_v62 = vld [vmem:[%s4271_s4 + $0x88] sm:$0xff] }
 0x753   :  { %1532 = vmatpush.msrb.mxu0 %v2146_v23  ;;  %1552 = vmatpush.msrb.mxu1 %v2147_v8  ;;  %v1590_v23 = vld [vmem:[%s4271_s4 + $0x40] sm:$0xff] }
 0x755   :  { %1533 = vmatpush.msrb.mxu0 %v2144_v20  ;;  %1553 = vmatpush.msrb.mxu1 %v2145_v24 }
 0x757   :  { %1534 = vmatpush.msrb.mxu0 %v2142_v29  ;;  %1554 = vmatpush.msrb.mxu1 %v2143_v45  ;;  %v1588_v29 = vld [vmem:[%s4271_s4 + $0x30] sm:$0xff]  ;;  %v1597_v45 = vld [vmem:[%s4271_s4 + $0x78] sm:$0xff] }
 0x759   :  { %1535 = vmatpush.msrb.mxu0 %v2140_v60  ;;  %1555 = vmatpush.msrb.mxu1 %v2141_v63  ;;  %v1621_v60 = vld [vmem:[%s4271_s4 + $0x138] sm:$0xff]  ;;  %v1595_v63 = vld [vmem:[%s4271_s4 + $0x68] sm:$0xff] }
 0x75b   :  { %1536 = vmatpush.msrb.mxu0 %v2138_v30  ;;  %1556 = vmatpush.msrb.mxu1 %v2139_v31  ;;  %v1619_v30 = vld [vmem:[%s4271_s4 + $0x128] sm:$0xff]  ;;  %v1584_v31 = vld [vmem:[%s4271_s4 + $0x10] sm:$0xff] }
 0x75d   :  { %1537 = vmatpush.msrb.mxu0 %v2136_v47  ;;  %1557 = vmatpush.msrb.mxu1 %v2137_v5  ;;  %v1593_v47 = vld [vmem:[%s4271_s4 + $0x58] sm:$0xff] }
 0x75e   :  { %v1617_v5 = vld [vmem:[%s4271_s4 + $0x118] sm:$0xff] }
 0x75f   :  { %1538 = vmatpush.msrb.mxu0 %v2134_v17  ;;  %1558 = vmatpush.msrb.mxu1 %v2135_v21  ;;  %v1591_v17 = vld [vmem:[%s4271_s4 + $0x48] sm:$0xff] }
 0x760   :  { %v1615_v21 = vld [vmem:[%s4271_s4 + $0x108] sm:$0xff] }
 0x761   :  { %1539 = vmatpush.msrb.mxu0 %v2132_v32  ;;  %1559 = vmatpush.msrb.mxu1 %v2133_v13  ;;  %v1589_v32 = vld [vmem:[%s4271_s4 + $0x38] sm:$0xff]  ;;  %v1587_v13 = vld [vmem:[%s4271_s4 + $0x28] sm:$0xff] }
 0x763   :  { %1540 = vmatpush.msrb.mxu0 %v2130_v48  ;;  %v1585_v48 = vld [vmem:[%s4271_s4 + $0x18] sm:$0xff] }
 0x765   :  { %1541 = vmatpush.msrb.mxu0 %v2128_v52  ;;  %v1729_v52 = vld [vmem:[%s4272_s5 + $0x70] sm:$0xff] }
 0x767   :  { %1542 = vmatpush.msrb.mxu0 %v2126_v58  ;;  %v1727_v58 = vld [vmem:[%s4272_s5 + $0x60] sm:$0xff] }
 0x769   :  { %1543 = vmatpush.msrb.mxu0 %v2124_v36  ;;  %v1723_v36 = vld [vmem:[%s4272_s5 + $0x40] sm:$0xff] }
 0x76b   :  { %1544 = vmatpush.msrb.mxu0 %v2122_v1 }
 0x76d   :  { %1705 = vmatpush.msra.mxu0 %v1621_v60 }
 0x76f   :  { %1706 = vmatpush.msra.mxu0 %v1619_v30 }
 0x771   :  { %1707 = vmatpush.msra.mxu0 %v1617_v5 }
 0x773   :  { %1708 = vmatpush.msra.mxu0 %v1615_v21 }
 0x7aa   :  { %v1344_v18 = vpop.f32.mrf.mxu1 }
 0x7ab   :  { %v1345_v25 = vadd.f32 %v3621_v12, %v1344_v18  ;;  %v1613_v18 = vld [vmem:[%s4271_s4 + $0xf8] sm:$0xff] }
 0x7ad   :  { %1396 = vmatmul.f32.vlgmr.msrb.gmra.mxu2 %v1345_v25  ;;  %1416 = vmatmul.f32.vlgmr.msrb.gmra.mxu3 %v1345_v25  ;;  %v1611_v25 = vld [vmem:[%s4271_s4 + $0xe8] sm:$0xff] }
 0x7ae   :  { %1633 = vmatpush.msrb.mxu2 %v1612_v4  ;;  %1665 = vmatpush.msrb.mxu3 %v1620_v6 }
 0x7b0   :  { %1634 = vmatpush.msrb.mxu2 %v1610_v7  ;;  %1666 = vmatpush.msrb.mxu3 %v1618_v46 }
 0x7b2   :  { %v1458_v22 = vpop.f32.mrf.mxu1  ;;  %1635 = vmatpush.msrb.mxu2 %v1608_v49  ;;  %1667 = vmatpush.msrb.mxu3 %v1616_v54 }
 0x7b3   :  { %v1459_v50 = vadd.f32 %v1458_v22, %v1445_v53  ;;  %v1600_v53 = vld [vmem:[%s4271_s4 + $0x90] sm:$0xff]  ;;  %v1607_v22 = vld [vmem:[%s4271_s4 + $0xc8] sm:$0xff] }
 0x7b4   :  { %1636 = vmatpush.msrb.mxu2 %v1606_v55  ;;  %1668 = vmatpush.msrb.mxu3 %v1614_v15  ;;  %v1721_v15 = vld [vmem:[%s4272_s5 + $0x30] sm:$0xff] }
 0x7b5   :  { %1470 = vmatmul.bf16.vlgmr.msra.gmra.mxu2 %v1432_v26  ;;  %v1609_v26 = vld [vmem:[%s4271_s4 + $0xd8] sm:$0xff] }
 0x7b6   :  { %1637 = vmatpush.msrb.mxu2 %v1604_v19  ;;  %v1718_v19 = vld [vmem:[%s4272_s5 + $0x18] sm:$0xff] }
 0x7b8   :  { %1638 = vmatpush.msrb.mxu2 %v1602_v44  ;;  %v1716_v44 = vld [vmem:[%s4272_s5 + $0x8] sm:$0xff] }
 0x7ba   :  { %v1460_v27 = vpop.f32.mrf.mxu1  ;;  %1639 = vmatpush.msrb.mxu2 %v1600_v53  ;;  %v1734_v53 = vld [vmem:[%s4272_s5 + $0x98] sm:$0xff] }
 0x7bb   :  { %v1605_v27 = vld [vmem:[%s4271_s4 + $0xb8] sm:$0xff] }
 0x7bc   :  { %1640 = vmatpush.msrb.mxu2 %v1598_v37  ;;  %v1732_v37 = vld [vmem:[%s4272_s5 + $0x88] sm:$0xff] }
 0x7be   :  { %1641 = vmatpush.msrb.mxu2 %v1596_v38  ;;  %v2155_v38 = vld [vmem:[%s4269_s6 + $0x2] ss:$4 sm:$0x3] }
 0x7c0   :  { %1642 = vmatpush.msrb.mxu2 %v1594_v42 }
 0x7c2   :  { %1643 = vmatpush.msrb.mxu2 %v1592_v41 }
 0x7c4   :  { %1644 = vmatpush.msrb.mxu2 %v1590_v23 }
 0x7c6   :  { %1645 = vmatpush.msrb.mxu2 %v1588_v29 }
 0x830   :  { %v1397_v14 = vpop.f32.mrf.mxu2  ;;  %v4131_v8 = vpop.f32.mrf.mxu3 }
 0x831   :  { %v4021_v10 = vadd.f32 %v1397_v14, %v3846_v43  ;;  %v2131_v43 = vld [vmem:[%s4270_s3 + $0x848] sm:$0xff]  ;;  %v1582_v14 = vld [vmem:[%s4271_s4] sm:$0xff] }
 0x832   :  { %1560 = vmatpush.msrb.mxu1 %v2131_v43  ;;  %v1583_v43 = vld [vmem:[%s4271_s4 + $0x8] sm:$0xff] }
 0x834   :  { %1561 = vmatpush.msrb.mxu1 %v2129_v59  ;;  %v1728_v59 = vld [vmem:[%s4272_s5 + $0x68] sm:$0xff] }
 0x836   :  { %1562 = vmatpush.msrb.mxu1 %v2127_v2 }
 0x838   :  { %v1471_v61 = vpop.f32.mrf.mxu2  ;;  %1563 = vmatpush.msrb.mxu1 %v2125_v0 }
 0x839   :  { %v1472_v28 = vadd.f32 %v1471_v61, %v1459_v50  ;;  %v1730_v50 = vld [vmem:[%s4272_s5 + $0x78] sm:$0xff]  ;;  %v526_v61 = vadd.f32 %v2959_v11, %v2888_v56  ;;  %v1724_v11 = vld [vmem:[%s4272_s5 + $0x48] sm:$0xff] }
 0x83a   :  { %1564 = vmatpush.msrb.mxu1 %v2123_v3 }
 0x83b   :  { %v1475_v34 = vmax.f32 %v1472_v28, 0.0  ;;  %v676_v2 = vadd.f32 %v3199_v9, %v526_v61  ;;  %v1726_v28 = vld [vmem:[%s4272_s5 + $0x58] sm:$0xff] }
 0x83c   :  { %1740 = vmatpush.msra.mxu1 %v1730_v50 }
 0x83d   :  { %1492 = vmatmul.f32.vlgmr.msra.gmra.mxu3 %v1475_v34  ;;  %v825_v34 = vadd.f32 %v3433_v51, %v676_v2  ;;  %v2154_v51 = vld [vmem:[%s4269_s6 + $0x1] ss:$4 sm:$0x3] }
 0x83e   :  { %1673 = vmatpush.msra.mxu3 %v1613_v18  ;;  %1741 = vmatpush.msra.mxu1 %v1729_v52  ;;  %v1574_v3 = vperm.slane %v2154_v51, 0  ;;  %v1719_v18 = vld [vmem:[%s4272_s5 + $0x20] sm:$0xff] }
 0x83f   :  { %v974_v56 = vadd.f32 %v3608_v33, %v825_v34  ;;  %v1722_v33 = vld [vmem:[%s4272_s5 + $0x38] sm:$0xff] }
 0x840   :  { %v1473_v35 = vpop.f32.mrf.mxu2  ;;  %1674 = vmatpush.msra.mxu3 %v1611_v25  ;;  %1742 = vmatpush.msra.mxu1 %v1728_v59  ;;  %v1717_v25 = vld [vmem:[%s4272_s5 + $0x10] sm:$0xff] }
 0x841   :  { %v1725_v35 = vld [vmem:[%s4272_s5 + $0x50] sm:$0xff]  ;;  %v1123_v9 = vadd.f32 %v3762_v57, %v974_v56  ;;  %v1575_v57 = vperm.slane %v2154_v51, 1 }
 0x842   :  { %1675 = vmatpush.msra.mxu3 %v1609_v26  ;;  %1743 = vmatpush.msra.mxu1 %v1727_v58  ;;  %v1715_v26 = vld [vmem:[%s4272_s5] sm:$0xff] }
 0x843   :  { %v1272_v0 = vadd.f32 %v3948_v16, %v1123_v9 }
 0x844   :  { %1676 = vmatpush.msra.mxu3 %v1607_v22  ;;  %1744 = vmatpush.msra.mxu1 %v1726_v28  ;;  %v1733_v22 = vld [vmem:[%s4272_s5 + $0x90] sm:$0xff] }
 0x845   :  { %v1421_v1 = vadd.f32 %v4131_v8, %v1272_v0  ;;  %v1626_v8 = vperm.slane %v2155_v38, 1 }
 0x846   :  { %1677 = vmatpush.msra.mxu3 %v1605_v27  ;;  %1745 = vmatpush.msra.mxu1 %v1725_v35  ;;  %v1731_v27 = vld [vmem:[%s4272_s5 + $0x80] sm:$0xff] }
 0x848   :  { %1678 = vmatpush.msra.mxu3 %v1603_v40  ;;  %1746 = vmatpush.msra.mxu1 %v1724_v11  ;;  %v1625_v40 = vperm.slane %v2155_v38, 0 }
 0x84a   :  { %1679 = vmatpush.msra.mxu3 %v1601_v39  ;;  %1747 = vmatpush.msra.mxu1 %v1723_v36 }
 0x84c   :  { %1680 = vmatpush.msra.mxu3 %v1599_v62  ;;  %1748 = vmatpush.msra.mxu1 %v1722_v33 }
 0x84e   :  { %1681 = vmatpush.msra.mxu3 %v1597_v45  ;;  %1749 = vmatpush.msra.mxu1 %v1721_v15 }
 0x850   :  { %1682 = vmatpush.msra.mxu3 %v1595_v63 }
 0x852   :  { %1683 = vmatpush.msra.mxu3 %v1593_v47 }
 0x854   :  { %1684 = vmatpush.msra.mxu3 %v1591_v17 }
 0x856   :  { %1685 = vmatpush.msra.mxu3 %v1589_v32 }
 0x858   :  { %1686 = vmatpush.msra.mxu3 %v1587_v13 }
 0x85a   :  { %1687 = vmatpush.msra.mxu3 %v1585_v48 }
 0x85c   :  { %1688 = vmatpush.msra.mxu3 %v1583_v43 }
 0x8c0   :  { %v1493_v20 = vpop.f32.mrf.mxu3 }
 0x8c1   :  { %v1494_v24 = vadd.f32 %v3621_v12, %v1493_v20  ;;  %v1586_v12 = vld [vmem:[%s4271_s4 + $0x20] sm:$0xff] }
 0x8c2   :  { %1646 = vmatpush.msrb.mxu2 %v1586_v12  ;;  %v2184_v12 = vld [vmem:[%s4269_s6 + $0x3] ss:$0 sm:$0xff] }
 0x8c3   :  { %1545 = vmatmul.f32.vlgmr.msrb.gmra.mxu0 %v1494_v24  ;;  %1565 = vmatmul.f32.vlgmr.msrb.gmra.mxu1 %v1494_v24 }
 0x8c4   :  { %1647 = vmatpush.msrb.mxu2 %v1584_v31 }
 0x8c6   :  { %1648 = vmatpush.msrb.mxu2 %v1582_v14 }
 0x8c8   :  { %1772 = vmatpush.msra.mxu2 %v1734_v53 }
 0x8ca   :  { %1773 = vmatpush.msra.mxu2 %v1733_v22 }
 0x8cc   :  { %1774 = vmatpush.msra.mxu2 %v1732_v37 }
 0x8ce   :  { %1775 = vmatpush.msra.mxu2 %v1731_v27 }
 0x940   :  { %v1546_v4 = vpop.f32.mrf.mxu0  ;;  %v1566_v6 = vpop.f32.mrf.mxu1 }
 0x941   :  { %v1569_v7 = vadd.f32 %v1546_v4, %v4021_v10  ;;  %v1570_v46 = vadd.f32 %v1566_v6, %v1421_v1  ;;  %v1720_v10 = vld [vmem:[%s4272_s5 + $0x28] sm:$0xff] }
 0x942   :  { %1750 = vmatpush.msra.mxu1 %v1720_v10 }
 0x943   :  { %v1578_v49 = vadd.f32 %v1574_v3, %v1569_v7  ;;  %v1579_v54 = vadd.f32 %v1575_v57, %v1570_v46 }
 0x944   :  { %1751 = vmatpush.msra.mxu1 %v1719_v18 }
 0x945   :  { %v1580_v55 = vmax.f32 %v1578_v49, 0.0  ;;  %v1581_v16 = vmax.f32 %v1579_v54, 0.0 }
 0x946   :  { %1752 = vmatpush.msra.mxu1 %v1718_v19 }
 0x947   :  { %1649 = vmatmul.f32.vlgmr.msrb.gmra.mxu2 %v1580_v55  ;;  %2156 = vmatmul.msk.f32.vlgmr.msrb.gmra.mxu3 %vm1629_vm0, %v1581_v16 }
 0x948   :  { %2157 = vmatmul.msk.f32.vlgmr.msra.gmra.mxu0 %vm1629_vm0, %v1581_v16  ;;  %1753 = vmatpush.msra.mxu1 %v1717_v25 }
 0x94a   :  { %1754 = vmatpush.msra.mxu1 %v1716_v44 }
 0x94c   :  { %1755 = vmatpush.msra.mxu1 %v1715_v26 }
 0x94f   :  { %1689 = vmatmul.f32.vlgmr.msra.gmra.mxu3 %v1580_v55 }
 0x9c5   :  { %v1710_v29 = vpop.f32.mrf.mxu0 }
 0x9ca   :  { %v1650_v42 = vpop.f32.mrf.mxu2  ;;  %v1670_v39 = vpop.f32.mrf.mxu3 }
 0x9cb   :  { %v1651_v41 = vadd.f32 %v1650_v42, %v1625_v40 }
 0x9cd   :  { %v1671_v62 = vadd.f32 %v1670_v39, %v1651_v41 }
 0x9cf   :  { %v1713_v23 = vmax.f32 %v1671_v62, 0.0 }
 0x9d1   :  { %1756 = vmatmul.f32.vlgmr.msra.gmra.mxu1 %v1713_v23 }
 0x9d2   :  { %v1690_v20 = vpop.f32.mrf.mxu3 }
 0x9d3   :  { %v1691_v24 = vadd.f32 %v1690_v20, %v1626_v8 }
 0x9d5   :  { %v1711_v45 = vadd.f32 %v1710_v29, %v1691_v24 }
 0x9d7   :  { %v1714_v60 = vmax.f32 %v1711_v45, 0.0 }
 0x9d9   :  { %2158 = vmatmul.msk.f32.vlgmr.msra.gmra.mxu2 %vm1629_vm0, %v1714_v60 }
 0xa4e   :  { %v1757_v63 = vpop.f32.mrf.mxu1 }
 0xa4f   :  { %v1758_v30 = vadd.f32 %v2184_v12, %v1757_v63 }
 0xa5c   :  { %v1777_v31 = vpop.f32.mrf.mxu2 }
 0xa5d   :  { %v1778_v47 = vadd.f32 %v1777_v31, %v1758_v30 }
 0xa5f   :  { %1781 = vst.msk [vmem:[%s4273_s7] sm:$0xff] %vm1780_vm1, %v1778_v47 }

</bundles_post_ra>
